<compile_context>
chip_gen: v5e
topology: v5e:2x2
jax: 0.10.0
libtpu: 0.0.40
codegen_flags: <defaults>
</compile_context>

<pallas_src>
import functools
import math

import jax
import jax.numpy as jnp
from jax import lax
from jax.experimental import pallas as pl
from jax.experimental.pallas import tpu as pltpu


def _round_up(x, m):
    return (x + m - 1) // m * m


# --------------------------- fused LSTM stack --------------------------------
def _lstm_stack_kernel(*refs, num_layers, hidden, seq_len):
    """refs = (gx, whh_0, [wih_1, b_1, whh_1, ...], out_ref).

    gx    : (T, B, 4H)  precomputed x @ W_ih0^T + b0, gate cols = [i|f|o|g]
    whh_l : (H, 4H)     recurrent weights (transposed), gate cols = [i|f|o|g]
    wih_l : (H, 4H)     input weights for layers >= 1 (transposed)
    b_l   : (1, 4H)     fused bias (b_ih + b_hh) for layers >= 1
    out   : (T, B, H)   top-layer h_t for every timestep
    """
    gx_ref = refs[0]
    whh = [refs[1]]
    wih = [None]
    bias = [None]
    idx = 2
    for _ in range(1, num_layers):
        wih.append(refs[idx])
        bias.append(refs[idx + 1])
        whh.append(refs[idx + 2])
        idx += 3
    out_ref = refs[idx]

    H = hidden
    B = gx_ref.shape[1]

    def step(t, carry):
        hs, cs = carry                                   # tuples of (B, H)
        x_gates = gx_ref[t]                              # (B, 4H)
        new_h, new_c = [], []
        h_in = None
        for l in range(num_layers):
            if l == 0:
                gates = x_gates + jnp.dot(
                    hs[0], whh[0][...], preferred_element_type=jnp.float32)
            else:
                gates = (
                    jnp.dot(h_in, wih[l][...], preferred_element_type=jnp.float32)
                    + jnp.dot(hs[l], whh[l][...], preferred_element_type=jnp.float32)
                    + bias[l][...])
            # gate column order is [i | f | o | g]: one contiguous sigmoid slab
            sig = jax.nn.sigmoid(gates[:, :3 * H])
            g_g = jnp.tanh(gates[:, 3 * H:])
            i_g = sig[:, 0 * H:1 * H]
            f_g = sig[:, 1 * H:2 * H]
            o_g = sig[:, 2 * H:3 * H]
            c_new = f_g * cs[l] + i_g * g_g
            h_new = o_g * jnp.tanh(c_new)
            new_h.append(h_new)
            new_c.append(c_new)
            h_in = h_new
        out_ref[t] = h_in                                # top-layer h_t
        return tuple(new_h), tuple(new_c)

    zeros = jnp.zeros((B, H), jnp.float32)
    init = (tuple(zeros for _ in range(num_layers)),
            tuple(zeros for _ in range(num_layers)))
    lax.fori_loop(0, seq_len, step, init, unroll=True)


def lstm_stack(gates_x, lstm_params):
    """gates_x: (T, B, 4H) precomputed layer-0 input gates. Returns (T, B, H)."""
    T, B, four_h = gates_x.shape
    H = four_h // 4
    L = len(lstm_params)
    inputs = [gates_x, lstm_params[0]["w_hh_t"]]
    for l in range(1, L):
        inputs += [lstm_params[l]["w_ih_t"], lstm_params[l]["b"],
                   lstm_params[l]["w_hh_t"]]
    kernel = functools.partial(_lstm_stack_kernel,
                               num_layers=L, hidden=H, seq_len=T)
    # Single invocation (no grid): the serial recurrence runs as a fully
    # unrolled in-kernel loop; all weights and activations stay in VMEM.
    return pl.pallas_call(
        kernel,
        out_shape=jax.ShapeDtypeStruct((T, B, H), jnp.float32),
    )(*inputs)


# ------------------------------ MLP head --------------------------------------
def _mlp_kernel(x_ref, w1, b1, w2, b2, w3, b3, w4, b4, w5, b5, o_ref):
    # Linear(H,256)+ReLU -> Linear(256,128)+ReLU -> Linear(128,64)+ReLU
    #   -> Linear(64,32)+ReLU -> Linear(32,out)
    # TODO(synk): Dropout(0.5) is identity here (eval mode); training-mode
    # dropout would need pltpu.prng_* masks.
    h = x_ref[...]
    h = jnp.maximum(jnp.dot(h, w1[...], preferred_element_type=jnp.float32) + b1[...], 0.0)
    h = jnp.maximum(jnp.dot(h, w2[...], preferred_element_type=jnp.float32) + b2[...], 0.0)
    h = jnp.maximum(jnp.dot(h, w3[...], preferred_element_type=jnp.float32) + b3[...], 0.0)
    h = jnp.maximum(jnp.dot(h, w4[...], preferred_element_type=jnp.float32) + b4[...], 0.0)
    o_ref[...] = jnp.dot(h, w5[...], preferred_element_type=jnp.float32) + b5[...]


def mlp_apply(x_flat, p, *, max_row_tile=512):
    """x_flat: (N, H) -> (N, out). Rows tiled over the grid; weights resident."""
    N, H = x_flat.shape
    out_dim = p["w5"].shape[1]
    tile = min(max_row_tile, _round_up(N, 8))
    n_pad = _round_up(N, tile)
    if n_pad != N:
        x_flat = jnp.pad(x_flat, ((0, n_pad - N), (0, 0)))
    names = ("w1", "b1", "w2", "b2", "w3", "b3", "w4", "b4", "w5", "b5")
    weight_specs = [pl.BlockSpec(p[n].shape, lambda i: (0, 0)) for n in names]

    out = pl.pallas_call(
        _mlp_kernel,
        out_shape=jax.ShapeDtypeStruct((n_pad, out_dim), jnp.float32),
        grid_spec=pltpu.PrefetchScalarGridSpec(
            num_scalar_prefetch=0,
            grid=(n_pad // tile,),
            in_specs=[pl.BlockSpec((tile, H), lambda i: (i, 0))] + weight_specs,
            out_specs=pl.BlockSpec((tile, out_dim), lambda i: (i, 0)),
        ),
        compiler_params=pltpu.CompilerParams(
            dimension_semantics=("parallel",)),
    )(x_flat, *[p[n] for n in names])
    return out[:N] if n_pad != N else out


# --------------------------- params / forward ---------------------------------
def _reorder_gate_rows(w):
    """PyTorch gate-row order [i|f|g|o] -> kernel order [i|f|o|g]."""
    H = w.shape[0] // 4
    return jnp.concatenate([w[:2 * H], w[3 * H:], w[2 * H:3 * H]], axis=0)


def init_generator_params(key, input_size, hidden_size, num_layers, output_size):
    params = {"lstm": [], "mlp": {}}
    bound = 1.0 / math.sqrt(hidden_size)
    for layer in range(num_layers):
        d_in = input_size if layer == 0 else hidden_size
        key, k1, k2, k3, k4 = jax.random.split(key, 5)
        w_ih = jax.random.uniform(k1, (4 * hidden_size, d_in), jnp.float32, -bound, bound)
        w_hh = jax.random.uniform(k2, (4 * hidden_size, hidden_size), jnp.float32, -bound, bound)
        b_ih = jax.random.uniform(k3, (4 * hidden_size,), jnp.float32, -bound, bound)
        b_hh = jax.random.uniform(k4, (4 * hidden_size,), jnp.float32, -bound, bound)
        # Permute gate blocks consistently (weights + bias) -> numerics unchanged.
        params["lstm"].append({
            "w_ih_t": _reorder_gate_rows(w_ih).T,                    # (d_in, 4H)
            "w_hh_t": _reorder_gate_rows(w_hh).T,                    # (H, 4H)
            "b": _reorder_gate_rows((b_ih + b_hh)[:, None]).T,       # (1, 4H)
        })
    dims = [hidden_size, 256, 128, 64, 32, output_size]
    for i in range(5):
        d_in, d_out = dims[i], dims[i + 1]
        key, k1, k2 = jax.random.split(key, 3)
        bd = 1.0 / math.sqrt(d_in)
        params["mlp"][f"w{i + 1}"] = jax.random.uniform(k1, (d_in, d_out), jnp.float32, -bd, bd)
        params["mlp"][f"b{i + 1}"] = jax.random.uniform(k2, (1, d_out), jnp.float32, -bd, bd)
    return params


@jax.jit
def generator_forward(params, x):
    """x: (B, T, input_size) batch_first, like the PyTorch module."""
    B, T, D = x.shape
    lstm_p = params["lstm"]
    H = lstm_p[0]["w_hh_t"].shape[0]
    # Hoisted layer-0 input projection: one (B*T, D) x (D, 4H) matmul.
    gx = (jnp.dot(x.reshape(B * T, D), lstm_p[0]["w_ih_t"],
                  preferred_element_type=jnp.float32)
          + lstm_p[0]["b"])
    gx = gx.reshape(B, T, 4 * H).transpose(1, 0, 2)       # time-major (T, B, 4H)
    h = lstm_stack(gx, lstm_p)                            # (T, B, H)
    flat = h.reshape(T * B, H)                            # stay time-major; no wide transpose
    out = mlp_apply(flat, params["mlp"])                  # (T*B, output_size)
    return out.reshape(T, B, -1).transpose(1, 0, 2)       # tiny (B, T, out) transpose


if __name__ == "__main__":
    input_size, hidden_size, num_layers, output_size = 4, 32, 2, 4
    B, T = 2, 8

    key = jax.random.PRNGKey(0)
    key, pkey, xkey = jax.random.split(key, 3)
    params = init_generator_params(pkey, input_size, hidden_size,
                                   num_layers, output_size)
    x = jax.random.normal(xkey, (B, T, input_size), jnp.float32)

    y = generator_forward(params, x)
    jax.block_until_ready(y)
    assert y.shape == (B, T, output_size)
    assert bool(jnp.all(jnp.isfinite(y)))
    print("KERNEL_OK")
</pallas_src>

<mosaic_0001>
module attributes {stable_mosaic.version = 11 : i64} {
  func.func @_lstm_stack_kernel(%arg0: memref<8x2x128xf32, #tpu.memory_space<vmem>>, %arg1: memref<32x128xf32, #tpu.memory_space<vmem>>, %arg2: memref<32x128xf32, #tpu.memory_space<vmem>>, %arg3: memref<1x128xf32, #tpu.memory_space<vmem>>, %arg4: memref<32x128xf32, #tpu.memory_space<vmem>>, %arg5: memref<8x2x32xf32, #tpu.memory_space<vmem>>) attributes {dimension_semantics = [], scalar_prefetch = 0 : i64, scratch_operands = 0 : i64, tpu.core_type = #tpu.core_type<tc>} {
    %cst = arith.constant 0.000000e+00 : f32
    %0 = vector.broadcast %cst : f32 to vector<2x32xf32>
    %c0_i32 = arith.constant 0 : i32
    %1 = arith.index_cast %c0_i32 : i32 to index
    %c0 = arith.constant 0 : index
    %c0_0 = arith.constant 0 : index
    %2 = vector.load %arg0[%1, %c0, %c0_0] : memref<8x2x128xf32, #tpu.memory_space<vmem>>, vector<1x2x128xf32>
    %3 = vector.shape_cast %2 : vector<1x2x128xf32> to vector<2x128xf32>
    %c0_1 = arith.constant 0 : index
    %c0_2 = arith.constant 0 : index
    %4 = vector.load %arg1[%c0_1, %c0_2] : memref<32x128xf32, #tpu.memory_space<vmem>>, vector<32x128xf32>
    %cst_3 = arith.constant dense<0.000000e+00> : vector<2x128xf32>
    %5 = tpu.matmul %0, %4, %cst_3 {dimension_numbers = #tpu.dot_dimension_numbers<[1], [0], [0], [1], [0, 0, 1, 1], [], []>} : vector<2x32xf32>, vector<32x128xf32>, vector<2x128xf32> -> vector<2x128xf32>
    %6 = arith.addf %3, %5 : vector<2x128xf32>
    %7 = vector.extract_strided_slice %6 {offsets = [0, 0], sizes = [2, 96], strides = [1, 1]} : vector<2x128xf32> to vector<2x96xf32>
    %8 = arith.negf %7 : vector<2x96xf32>
    %9 = math.exp %8 : vector<2x96xf32>
    %cst_4 = arith.constant 1.000000e+00 : f32
    %10 = vector.broadcast %cst_4 : f32 to vector<2x96xf32>
    %11 = arith.addf %10, %9 : vector<2x96xf32>
    %12 = arith.divf %10, %11 : vector<2x96xf32>
    %13 = vector.extract_strided_slice %6 {offsets = [0, 96], sizes = [2, 32], strides = [1, 1]} : vector<2x128xf32> to vector<2x32xf32>
    %14 = math.tanh %13 : vector<2x32xf32>
    %15 = vector.extract_strided_slice %12 {offsets = [0, 0], sizes = [2, 32], strides = [1, 1]} : vector<2x96xf32> to vector<2x32xf32>
    %16 = vector.extract_strided_slice %12 {offsets = [0, 32], sizes = [2, 32], strides = [1, 1]} : vector<2x96xf32> to vector<2x32xf32>
    %17 = vector.extract_strided_slice %12 {offsets = [0, 64], sizes = [2, 32], strides = [1, 1]} : vector<2x96xf32> to vector<2x32xf32>
    %18 = arith.mulf %16, %0 : vector<2x32xf32>
    %19 = arith.mulf %15, %14 : vector<2x32xf32>
    %20 = arith.addf %18, %19 : vector<2x32xf32>
    %21 = math.tanh %20 : vector<2x32xf32>
    %22 = arith.mulf %17, %21 : vector<2x32xf32>
    %c0_5 = arith.constant 0 : index
    %c0_6 = arith.constant 0 : index
    %23 = vector.load %arg2[%c0_5, %c0_6] : memref<32x128xf32, #tpu.memory_space<vmem>>, vector<32x128xf32>
    %cst_7 = arith.constant dense<0.000000e+00> : vector<2x128xf32>
    %24 = tpu.matmul %22, %23, %cst_7 {dimension_numbers = #tpu.dot_dimension_numbers<[1], [0], [0], [1], [0, 0, 1, 1], [], []>} : vector<2x32xf32>, vector<32x128xf32>, vector<2x128xf32> -> vector<2x128xf32>
    %c0_8 = arith.constant 0 : index
    %c0_9 = arith.constant 0 : index
    %25 = vector.load %arg4[%c0_8, %c0_9] : memref<32x128xf32, #tpu.memory_space<vmem>>, vector<32x128xf32>
    %cst_10 = arith.constant dense<0.000000e+00> : vector<2x128xf32>
    %26 = tpu.matmul %0, %25, %cst_10 {dimension_numbers = #tpu.dot_dimension_numbers<[1], [0], [0], [1], [0, 0, 1, 1], [], []>} : vector<2x32xf32>, vector<32x128xf32>, vector<2x128xf32> -> vector<2x128xf32>
    %27 = arith.addf %24, %26 : vector<2x128xf32>
    %c0_11 = arith.constant 0 : index
    %c0_12 = arith.constant 0 : index
    %28 = vector.load %arg3[%c0_11, %c0_12] : memref<1x128xf32, #tpu.memory_space<vmem>>, vector<1x128xf32>
    %29 = vector.broadcast %28 : vector<1x128xf32> to vector<2x128xf32>
    %30 = arith.addf %27, %29 : vector<2x128xf32>
    %31 = vector.extract_strided_slice %30 {offsets = [0, 0], sizes = [2, 96], strides = [1, 1]} : vector<2x128xf32> to vector<2x96xf32>
    %32 = arith.negf %31 : vector<2x96xf32>
    %33 = math.exp %32 : vector<2x96xf32>
    %cst_13 = arith.constant 1.000000e+00 : f32
    %34 = vector.broadcast %cst_13 : f32 to vector<2x96xf32>
    %35 = arith.addf %34, %33 : vector<2x96xf32>
    %36 = arith.divf %34, %35 : vector<2x96xf32>
    %37 = vector.extract_strided_slice %30 {offsets = [0, 96], sizes = [2, 32], strides = [1, 1]} : vector<2x128xf32> to vector<2x32xf32>
    %38 = math.tanh %37 : vector<2x32xf32>
    %39 = vector.extract_strided_slice %36 {offsets = [0, 0], sizes = [2, 32], strides = [1, 1]} : vector<2x96xf32> to vector<2x32xf32>
    %40 = vector.extract_strided_slice %36 {offsets = [0, 32], sizes = [2, 32], strides = [1, 1]} : vector<2x96xf32> to vector<2x32xf32>
    %41 = vector.extract_strided_slice %36 {offsets = [0, 64], sizes = [2, 32], strides = [1, 1]} : vector<2x96xf32> to vector<2x32xf32>
    %42 = arith.mulf %40, %0 : vector<2x32xf32>
    %43 = arith.mulf %39, %38 : vector<2x32xf32>
    %44 = arith.addf %42, %43 : vector<2x32xf32>
    %45 = math.tanh %44 : vector<2x32xf32>
    %46 = arith.mulf %41, %45 : vector<2x32xf32>
    %47 = arith.index_cast %c0_i32 : i32 to index
    %c0_14 = arith.constant 0 : index
    %c0_15 = arith.constant 0 : index
    %48 = vector.load %arg5[%47, %c0_14, %c0_15] : memref<8x2x32xf32, #tpu.memory_space<vmem>>, vector<1x2x32xf32>
    %49 = vector.shape_cast %48 : vector<1x2x32xf32> to vector<2x32xf32>
    %50 = vector.shape_cast %46 : vector<2x32xf32> to vector<1x2x32xf32>
    tpu.vector_store %arg5[%47, %c0_14, %c0_15], %50 {strides = array<i32>} : memref<8x2x32xf32, #tpu.memory_space<vmem>>, vector<1x2x32xf32>,
    %c1_i32 = arith.constant 1 : i32
    %51 = arith.index_cast %c1_i32 : i32 to index
    %c0_16 = arith.constant 0 : index
    %c0_17 = arith.constant 0 : index
    %52 = vector.load %arg0[%51, %c0_16, %c0_17] : memref<8x2x128xf32, #tpu.memory_space<vmem>>, vector<1x2x128xf32>
    %53 = vector.shape_cast %52 : vector<1x2x128xf32> to vector<2x128xf32>
    %c0_18 = arith.constant 0 : index
    %c0_19 = arith.constant 0 : index
    %54 = vector.load %arg1[%c0_18, %c0_19] : memref<32x128xf32, #tpu.memory_space<vmem>>, vector<32x128xf32>
    %cst_20 = arith.constant dense<0.000000e+00> : vector<2x128xf32>
    %55 = tpu.matmul %22, %54, %cst_20 {dimension_numbers = #tpu.dot_dimension_numbers<[1], [0], [0], [1], [0, 0, 1, 1], [], []>} : vector<2x32xf32>, vector<32x128xf32>, vector<2x128xf32> -> vector<2x128xf32>
    %56 = arith.addf %53, %55 : vector<2x128xf32>
    %57 = vector.extract_strided_slice %56 {offsets = [0, 0], sizes = [2, 96], strides = [1, 1]} : vector<2x128xf32> to vector<2x96xf32>
    %58 = arith.negf %57 : vector<2x96xf32>
    %59 = math.exp %58 : vector<2x96xf32>
    %cst_21 = arith.constant 1.000000e+00 : f32
    %60 = vector.broadcast %cst_21 : f32 to vector<2x96xf32>
    %61 = arith.addf %60, %59 : vector<2x96xf32>
    %62 = arith.divf %60, %61 : vector<2x96xf32>
    %63 = vector.extract_strided_slice %56 {offsets = [0, 96], sizes = [2, 32], strides = [1, 1]} : vector<2x128xf32> to vector<2x32xf32>
    %64 = math.tanh %63 : vector<2x32xf32>
    %65 = vector.extract_strided_slice %62 {offsets = [0, 0], sizes = [2, 32], strides = [1, 1]} : vector<2x96xf32> to vector<2x32xf32>
    %66 = vector.extract_strided_slice %62 {offsets = [0, 32], sizes = [2, 32], strides = [1, 1]} : vector<2x96xf32> to vector<2x32xf32>
    %67 = vector.extract_strided_slice %62 {offsets = [0, 64], sizes = [2, 32], strides = [1, 1]} : vector<2x96xf32> to vector<2x32xf32>
    %68 = arith.mulf %66, %20 : vector<2x32xf32>
    %69 = arith.mulf %65, %64 : vector<2x32xf32>
    %70 = arith.addf %68, %69 : vector<2x32xf32>
    %71 = math.tanh %70 : vector<2x32xf32>
    %72 = arith.mulf %67, %71 : vector<2x32xf32>
    %c0_22 = arith.constant 0 : index
    %c0_23 = arith.constant 0 : index
    %73 = vector.load %arg2[%c0_22, %c0_23] : memref<32x128xf32, #tpu.memory_space<vmem>>, vector<32x128xf32>
    %cst_24 = arith.constant dense<0.000000e+00> : vector<2x128xf32>
    %74 = tpu.matmul %72, %73, %cst_24 {dimension_numbers = #tpu.dot_dimension_numbers<[1], [0], [0], [1], [0, 0, 1, 1], [], []>} : vector<2x32xf32>, vector<32x128xf32>, vector<2x128xf32> -> vector<2x128xf32>
    %c0_25 = arith.constant 0 : index
    %c0_26 = arith.constant 0 : index
    %75 = vector.load %arg4[%c0_25, %c0_26] : memref<32x128xf32, #tpu.memory_space<vmem>>, vector<32x128xf32>
    %cst_27 = arith.constant dense<0.000000e+00> : vector<2x128xf32>
    %76 = tpu.matmul %46, %75, %cst_27 {dimension_numbers = #tpu.dot_dimension_numbers<[1], [0], [0], [1], [0, 0, 1, 1], [], []>} : vector<2x32xf32>, vector<32x128xf32>, vector<2x128xf32> -> vector<2x128xf32>
    %77 = arith.addf %74, %76 : vector<2x128xf32>
    %c0_28 = arith.constant 0 : index
    %c0_29 = arith.constant 0 : index
    %78 = vector.load %arg3[%c0_28, %c0_29] : memref<1x128xf32, #tpu.memory_space<vmem>>, vector<1x128xf32>
    %79 = vector.broadcast %78 : vector<1x128xf32> to vector<2x128xf32>
    %80 = arith.addf %77, %79 : vector<2x128xf32>
    %81 = vector.extract_strided_slice %80 {offsets = [0, 0], sizes = [2, 96], strides = [1, 1]} : vector<2x128xf32> to vector<2x96xf32>
    %82 = arith.negf %81 : vector<2x96xf32>
    %83 = math.exp %82 : vector<2x96xf32>
    %cst_30 = arith.constant 1.000000e+00 : f32
    %84 = vector.broadcast %cst_30 : f32 to vector<2x96xf32>
    %85 = arith.addf %84, %83 : vector<2x96xf32>
    %86 = arith.divf %84, %85 : vector<2x96xf32>
    %87 = vector.extract_strided_slice %80 {offsets = [0, 96], sizes = [2, 32], strides = [1, 1]} : vector<2x128xf32> to vector<2x32xf32>
    %88 = math.tanh %87 : vector<2x32xf32>
    %89 = vector.extract_strided_slice %86 {offsets = [0, 0], sizes = [2, 32], strides = [1, 1]} : vector<2x96xf32> to vector<2x32xf32>
    %90 = vector.extract_strided_slice %86 {offsets = [0, 32], sizes = [2, 32], strides = [1, 1]} : vector<2x96xf32> to vector<2x32xf32>
    %91 = vector.extract_strided_slice %86 {offsets = [0, 64], sizes = [2, 32], strides = [1, 1]} : vector<2x96xf32> to vector<2x32xf32>
    %92 = arith.mulf %90, %44 : vector<2x32xf32>
    %93 = arith.mulf %89, %88 : vector<2x32xf32>
    %94 = arith.addf %92, %93 : vector<2x32xf32>
    %95 = math.tanh %94 : vector<2x32xf32>
    %96 = arith.mulf %91, %95 : vector<2x32xf32>
    %97 = arith.index_cast %c1_i32 : i32 to index
    %c0_31 = arith.constant 0 : index
    %c0_32 = arith.constant 0 : index
    %98 = vector.load %arg5[%97, %c0_31, %c0_32] : memref<8x2x32xf32, #tpu.memory_space<vmem>>, vector<1x2x32xf32>
    %99 = vector.shape_cast %98 : vector<1x2x32xf32> to vector<2x32xf32>
    %100 = vector.shape_cast %96 : vector<2x32xf32> to vector<1x2x32xf32>
    tpu.vector_store %arg5[%97, %c0_31, %c0_32], %100 {strides = array<i32>} : memref<8x2x32xf32, #tpu.memory_space<vmem>>, vector<1x2x32xf32>,
    %c2_i32 = arith.constant 2 : i32
    %101 = arith.index_cast %c2_i32 : i32 to index
    %c0_33 = arith.constant 0 : index
    %c0_34 = arith.constant 0 : index
    %102 = vector.load %arg0[%101, %c0_33, %c0_34] : memref<8x2x128xf32, #tpu.memory_space<vmem>>, vector<1x2x128xf32>
    %103 = vector.shape_cast %102 : vector<1x2x128xf32> to vector<2x128xf32>
    %c0_35 = arith.constant 0 : index
    %c0_36 = arith.constant 0 : index
    %104 = vector.load %arg1[%c0_35, %c0_36] : memref<32x128xf32, #tpu.memory_space<vmem>>, vector<32x128xf32>
    %cst_37 = arith.constant dense<0.000000e+00> : vector<2x128xf32>
    %105 = tpu.matmul %72, %104, %cst_37 {dimension_numbers = #tpu.dot_dimension_numbers<[1], [0], [0], [1], [0, 0, 1, 1], [], []>} : vector<2x32xf32>, vector<32x128xf32>, vector<2x128xf32> -> vector<2x128xf32>
    %106 = arith.addf %103, %105 : vector<2x128xf32>
    %107 = vector.extract_strided_slice %106 {offsets = [0, 0], sizes = [2, 96], strides = [1, 1]} : vector<2x128xf32> to vector<2x96xf32>
    %108 = arith.negf %107 : vector<2x96xf32>
    %109 = math.exp %108 : vector<2x96xf32>
    %cst_38 = arith.constant 1.000000e+00 : f32
    %110 = vector.broadcast %cst_38 : f32 to vector<2x96xf32>
    %111 = arith.addf %110, %109 : vector<2x96xf32>
    %112 = arith.divf %110, %111 : vector<2x96xf32>
    %113 = vector.extract_strided_slice %106 {offsets = [0, 96], sizes = [2, 32], strides = [1, 1]} : vector<2x128xf32> to vector<2x32xf32>
    %114 = math.tanh %113 : vector<2x32xf32>
    %115 = vector.extract_strided_slice %112 {offsets = [0, 0], sizes = [2, 32], strides = [1, 1]} : vector<2x96xf32> to vector<2x32xf32>
    %116 = vector.extract_strided_slice %112 {offsets = [0, 32], sizes = [2, 32], strides = [1, 1]} : vector<2x96xf32> to vector<2x32xf32>
    %117 = vector.extract_strided_slice %112 {offsets = [0, 64], sizes = [2, 32], strides = [1, 1]} : vector<2x96xf32> to vector<2x32xf32>
    %118 = arith.mulf %116, %70 : vector<2x32xf32>
    %119 = arith.mulf %115, %114 : vector<2x32xf32>
    %120 = arith.addf %118, %119 : vector<2x32xf32>
    %121 = math.tanh %120 : vector<2x32xf32>
    %122 = arith.mulf %117, %121 : vector<2x32xf32>
    %c0_39 = arith.constant 0 : index
    %c0_40 = arith.constant 0 : index
    %123 = vector.load %arg2[%c0_39, %c0_40] : memref<32x128xf32, #tpu.memory_space<vmem>>, vector<32x128xf32>
    %cst_41 = arith.constant dense<0.000000e+00> : vector<2x128xf32>
    %124 = tpu.matmul %122, %123, %cst_41 {dimension_numbers = #tpu.dot_dimension_numbers<[1], [0], [0], [1], [0, 0, 1, 1], [], []>} : vector<2x32xf32>, vector<32x128xf32>, vector<2x128xf32> -> vector<2x128xf32>
    %c0_42 = arith.constant 0 : index
    %c0_43 = arith.constant 0 : index
    %125 = vector.load %arg4[%c0_42, %c0_43] : memref<32x128xf32, #tpu.memory_space<vmem>>, vector<32x128xf32>
    %cst_44 = arith.constant dense<0.000000e+00> : vector<2x128xf32>
    %126 = tpu.matmul %96, %125, %cst_44 {dimension_numbers = #tpu.dot_dimension_numbers<[1], [0], [0], [1], [0, 0, 1, 1], [], []>} : vector<2x32xf32>, vector<32x128xf32>, vector<2x128xf32> -> vector<2x128xf32>
    %127 = arith.addf %124, %126 : vector<2x128xf32>
    %c0_45 = arith.constant 0 : index
    %c0_46 = arith.constant 0 : index
    %128 = vector.load %arg3[%c0_45, %c0_46] : memref<1x128xf32, #tpu.memory_space<vmem>>, vector<1x128xf32>
    %129 = vector.broadcast %128 : vector<1x128xf32> to vector<2x128xf32>
    %130 = arith.addf %127, %129 : vector<2x128xf32>
    %131 = vector.extract_strided_slice %130 {offsets = [0, 0], sizes = [2, 96], strides = [1, 1]} : vector<2x128xf32> to vector<2x96xf32>
    %132 = arith.negf %131 : vector<2x96xf32>
    %133 = math.exp %132 : vector<2x96xf32>
    %cst_47 = arith.constant 1.000000e+00 : f32
    %134 = vector.broadcast %cst_47 : f32 to vector<2x96xf32>
    %135 = arith.addf %134, %133 : vector<2x96xf32>
    %136 = arith.divf %134, %135 : vector<2x96xf32>
    %137 = vector.extract_strided_slice %130 {offsets = [0, 96], sizes = [2, 32], strides = [1, 1]} : vector<2x128xf32> to vector<2x32xf32>
    %138 = math.tanh %137 : vector<2x32xf32>
    %139 = vector.extract_strided_slice %136 {offsets = [0, 0], sizes = [2, 32], strides = [1, 1]} : vector<2x96xf32> to vector<2x32xf32>
    %140 = vector.extract_strided_slice %136 {offsets = [0, 32], sizes = [2, 32], strides = [1, 1]} : vector<2x96xf32> to vector<2x32xf32>
    %141 = vector.extract_strided_slice %136 {offsets = [0, 64], sizes = [2, 32], strides = [1, 1]} : vector<2x96xf32> to vector<2x32xf32>
    %142 = arith.mulf %140, %94 : vector<2x32xf32>
    %143 = arith.mulf %139, %138 : vector<2x32xf32>
    %144 = arith.addf %142, %143 : vector<2x32xf32>
    %145 = math.tanh %144 : vector<2x32xf32>
    %146 = arith.mulf %141, %145 : vector<2x32xf32>
    %147 = arith.index_cast %c2_i32 : i32 to index
    %c0_48 = arith.constant 0 : index
    %c0_49 = arith.constant 0 : index
    %148 = vector.load %arg5[%147, %c0_48, %c0_49] : memref<8x2x32xf32, #tpu.memory_space<vmem>>, vector<1x2x32xf32>
    %149 = vector.shape_cast %148 : vector<1x2x32xf32> to vector<2x32xf32>
    %150 = vector.shape_cast %146 : vector<2x32xf32> to vector<1x2x32xf32>
    tpu.vector_store %arg5[%147, %c0_48, %c0_49], %150 {strides = array<i32>} : memref<8x2x32xf32, #tpu.memory_space<vmem>>, vector<1x2x32xf32>,
    %c3_i32 = arith.constant 3 : i32
    %151 = arith.index_cast %c3_i32 : i32 to index
    %c0_50 = arith.constant 0 : index
    %c0_51 = arith.constant 0 : index
    %152 = vector.load %arg0[%151, %c0_50, %c0_51] : memref<8x2x128xf32, #tpu.memory_space<vmem>>, vector<1x2x128xf32>
    %153 = vector.shape_cast %152 : vector<1x2x128xf32> to vector<2x128xf32>
    %c0_52 = arith.constant 0 : index
    %c0_53 = arith.constant 0 : index
    %154 = vector.load %arg1[%c0_52, %c0_53] : memref<32x128xf32, #tpu.memory_space<vmem>>, vector<32x128xf32>
    %cst_54 = arith.constant dense<0.000000e+00> : vector<2x128xf32>
    %155 = tpu.matmul %122, %154, %cst_54 {dimension_numbers = #tpu.dot_dimension_numbers<[1], [0], [0], [1], [0, 0, 1, 1], [], []>} : vector<2x32xf32>, vector<32x128xf32>, vector<2x128xf32> -> vector<2x128xf32>
    %156 = arith.addf %153, %155 : vector<2x128xf32>
    %157 = vector.extract_strided_slice %156 {offsets = [0, 0], sizes = [2, 96], strides = [1, 1]} : vector<2x128xf32> to vector<2x96xf32>
    %158 = arith.negf %157 : vector<2x96xf32>
    %159 = math.exp %158 : vector<2x96xf32>
    %cst_55 = arith.constant 1.000000e+00 : f32
    %160 = vector.broadcast %cst_55 : f32 to vector<2x96xf32>
    %161 = arith.addf %160, %159 : vector<2x96xf32>
    %162 = arith.divf %160, %161 : vector<2x96xf32>
    %163 = vector.extract_strided_slice %156 {offsets = [0, 96], sizes = [2, 32], strides = [1, 1]} : vector<2x128xf32> to vector<2x32xf32>
    %164 = math.tanh %163 : vector<2x32xf32>
    %165 = vector.extract_strided_slice %162 {offsets = [0, 0], sizes = [2, 32], strides = [1, 1]} : vector<2x96xf32> to vector<2x32xf32>
    %166 = vector.extract_strided_slice %162 {offsets = [0, 32], sizes = [2, 32], strides = [1, 1]} : vector<2x96xf32> to vector<2x32xf32>
    %167 = vector.extract_strided_slice %162 {offsets = [0, 64], sizes = [2, 32], strides = [1, 1]} : vector<2x96xf32> to vector<2x32xf32>
    %168 = arith.mulf %166, %120 : vector<2x32xf32>
    %169 = arith.mulf %165, %164 : vector<2x32xf32>
    %170 = arith.addf %168, %169 : vector<2x32xf32>
    %171 = math.tanh %170 : vector<2x32xf32>
    %172 = arith.mulf %167, %171 : vector<2x32xf32>
    %c0_56 = arith.constant 0 : index
    %c0_57 = arith.constant 0 : index
    %173 = vector.load %arg2[%c0_56, %c0_57] : memref<32x128xf32, #tpu.memory_space<vmem>>, vector<32x128xf32>
    %cst_58 = arith.constant dense<0.000000e+00> : vector<2x128xf32>
    %174 = tpu.matmul %172, %173, %cst_58 {dimension_numbers = #tpu.dot_dimension_numbers<[1], [0], [0], [1], [0, 0, 1, 1], [], []>} : vector<2x32xf32>, vector<32x128xf32>, vector<2x128xf32> -> vector<2x128xf32>
    %c0_59 = arith.constant 0 : index
    %c0_60 = arith.constant 0 : index
    %175 = vector.load %arg4[%c0_59, %c0_60] : memref<32x128xf32, #tpu.memory_space<vmem>>, vector<32x128xf32>
    %cst_61 = arith.constant dense<0.000000e+00> : vector<2x128xf32>
    %176 = tpu.matmul %146, %175, %cst_61 {dimension_numbers = #tpu.dot_dimension_numbers<[1], [0], [0], [1], [0, 0, 1, 1], [], []>} : vector<2x32xf32>, vector<32x128xf32>, vector<2x128xf32> -> vector<2x128xf32>
    %177 = arith.addf %174, %176 : vector<2x128xf32>
    %c0_62 = arith.constant 0 : index
    %c0_63 = arith.constant 0 : index
    %178 = vector.load %arg3[%c0_62, %c0_63] : memref<1x128xf32, #tpu.memory_space<vmem>>, vector<1x128xf32>
    %179 = vector.broadcast %178 : vector<1x128xf32> to vector<2x128xf32>
    %180 = arith.addf %177, %179 : vector<2x128xf32>
    %181 = vector.extract_strided_slice %180 {offsets = [0, 0], sizes = [2, 96], strides = [1, 1]} : vector<2x128xf32> to vector<2x96xf32>
    %182 = arith.negf %181 : vector<2x96xf32>
    %183 = math.exp %182 : vector<2x96xf32>
    %cst_64 = arith.constant 1.000000e+00 : f32
    %184 = vector.broadcast %cst_64 : f32 to vector<2x96xf32>
    %185 = arith.addf %184, %183 : vector<2x96xf32>
    %186 = arith.divf %184, %185 : vector<2x96xf32>
    %187 = vector.extract_strided_slice %180 {offsets = [0, 96], sizes = [2, 32], strides = [1, 1]} : vector<2x128xf32> to vector<2x32xf32>
    %188 = math.tanh %187 : vector<2x32xf32>
    %189 = vector.extract_strided_slice %186 {offsets = [0, 0], sizes = [2, 32], strides = [1, 1]} : vector<2x96xf32> to vector<2x32xf32>
    %190 = vector.extract_strided_slice %186 {offsets = [0, 32], sizes = [2, 32], strides = [1, 1]} : vector<2x96xf32> to vector<2x32xf32>
    %191 = vector.extract_strided_slice %186 {offsets = [0, 64], sizes = [2, 32], strides = [1, 1]} : vector<2x96xf32> to vector<2x32xf32>
    %192 = arith.mulf %190, %144 : vector<2x32xf32>
    %193 = arith.mulf %189, %188 : vector<2x32xf32>
    %194 = arith.addf %192, %193 : vector<2x32xf32>
    %195 = math.tanh %194 : vector<2x32xf32>
    %196 = arith.mulf %191, %195 : vector<2x32xf32>
    %197 = arith.index_cast %c3_i32 : i32 to index
    %c0_65 = arith.constant 0 : index
    %c0_66 = arith.constant 0 : index
    %198 = vector.load %arg5[%197, %c0_65, %c0_66] : memref<8x2x32xf32, #tpu.memory_space<vmem>>, vector<1x2x32xf32>
    %199 = vector.shape_cast %198 : vector<1x2x32xf32> to vector<2x32xf32>
    %200 = vector.shape_cast %196 : vector<2x32xf32> to vector<1x2x32xf32>
    tpu.vector_store %arg5[%197, %c0_65, %c0_66], %200 {strides = array<i32>} : memref<8x2x32xf32, #tpu.memory_space<vmem>>, vector<1x2x32xf32>,
    %c4_i32 = arith.constant 4 : i32
    %201 = arith.index_cast %c4_i32 : i32 to index
    %c0_67 = arith.constant 0 : index
    %c0_68 = arith.constant 0 : index
    %202 = vector.load %arg0[%201, %c0_67, %c0_68] : memref<8x2x128xf32, #tpu.memory_space<vmem>>, vector<1x2x128xf32>
    %203 = vector.shape_cast %202 : vector<1x2x128xf32> to vector<2x128xf32>
    %c0_69 = arith.constant 0 : index
    %c0_70 = arith.constant 0 : index
    %204 = vector.load %arg1[%c0_69, %c0_70] : memref<32x128xf32, #tpu.memory_space<vmem>>, vector<32x128xf32>
    %cst_71 = arith.constant dense<0.000000e+00> : vector<2x128xf32>
    %205 = tpu.matmul %172, %204, %cst_71 {dimension_numbers = #tpu.dot_dimension_numbers<[1], [0], [0], [1], [0, 0, 1, 1], [], []>} : vector<2x32xf32>, vector<32x128xf32>, vector<2x128xf32> -> vector<2x128xf32>
    %206 = arith.addf %203, %205 : vector<2x128xf32>
    %207 = vector.extract_strided_slice %206 {offsets = [0, 0], sizes = [2, 96], strides = [1, 1]} : vector<2x128xf32> to vector<2x96xf32>
    %208 = arith.negf %207 : vector<2x96xf32>
    %209 = math.exp %208 : vector<2x96xf32>
    %cst_72 = arith.constant 1.000000e+00 : f32
    %210 = vector.broadcast %cst_72 : f32 to vector<2x96xf32>
    %211 = arith.addf %210, %209 : vector<2x96xf32>
    %212 = arith.divf %210, %211 : vector<2x96xf32>
    %213 = vector.extract_strided_slice %206 {offsets = [0, 96], sizes = [2, 32], strides = [1, 1]} : vector<2x128xf32> to vector<2x32xf32>
    %214 = math.tanh %213 : vector<2x32xf32>
    %215 = vector.extract_strided_slice %212 {offsets = [0, 0], sizes = [2, 32], strides = [1, 1]} : vector<2x96xf32> to vector<2x32xf32>
    %216 = vector.extract_strided_slice %212 {offsets = [0, 32], sizes = [2, 32], strides = [1, 1]} : vector<2x96xf32> to vector<2x32xf32>
    %217 = vector.extract_strided_slice %212 {offsets = [0, 64], sizes = [2, 32], strides = [1, 1]} : vector<2x96xf32> to vector<2x32xf32>
    %218 = arith.mulf %216, %170 : vector<2x32xf32>
    %219 = arith.mulf %215, %214 : vector<2x32xf32>
    %220 = arith.addf %218, %219 : vector<2x32xf32>
    %221 = math.tanh %220 : vector<2x32xf32>
    %222 = arith.mulf %217, %221 : vector<2x32xf32>
    %c0_73 = arith.constant 0 : index
    %c0_74 = arith.constant 0 : index
    %223 = vector.load %arg2[%c0_73, %c0_74] : memref<32x128xf32, #tpu.memory_space<vmem>>, vector<32x128xf32>
    %cst_75 = arith.constant dense<0.000000e+00> : vector<2x128xf32>
    %224 = tpu.matmul %222, %223, %cst_75 {dimension_numbers = #tpu.dot_dimension_numbers<[1], [0], [0], [1], [0, 0, 1, 1], [], []>} : vector<2x32xf32>, vector<32x128xf32>, vector<2x128xf32> -> vector<2x128xf32>
    %c0_76 = arith.constant 0 : index
    %c0_77 = arith.constant 0 : index
    %225 = vector.load %arg4[%c0_76, %c0_77] : memref<32x128xf32, #tpu.memory_space<vmem>>, vector<32x128xf32>
    %cst_78 = arith.constant dense<0.000000e+00> : vector<2x128xf32>
    %226 = tpu.matmul %196, %225, %cst_78 {dimension_numbers = #tpu.dot_dimension_numbers<[1], [0], [0], [1], [0, 0, 1, 1], [], []>} : vector<2x32xf32>, vector<32x128xf32>, vector<2x128xf32> -> vector<2x128xf32>
    %227 = arith.addf %224, %226 : vector<2x128xf32>
    %c0_79 = arith.constant 0 : index
    %c0_80 = arith.constant 0 : index
    %228 = vector.load %arg3[%c0_79, %c0_80] : memref<1x128xf32, #tpu.memory_space<vmem>>, vector<1x128xf32>
    %229 = vector.broadcast %228 : vector<1x128xf32> to vector<2x128xf32>
    %230 = arith.addf %227, %229 : vector<2x128xf32>
    %231 = vector.extract_strided_slice %230 {offsets = [0, 0], sizes = [2, 96], strides = [1, 1]} : vector<2x128xf32> to vector<2x96xf32>
    %232 = arith.negf %231 : vector<2x96xf32>
    %233 = math.exp %232 : vector<2x96xf32>
    %cst_81 = arith.constant 1.000000e+00 : f32
    %234 = vector.broadcast %cst_81 : f32 to vector<2x96xf32>
    %235 = arith.addf %234, %233 : vector<2x96xf32>
    %236 = arith.divf %234, %235 : vector<2x96xf32>
    %237 = vector.extract_strided_slice %230 {offsets = [0, 96], sizes = [2, 32], strides = [1, 1]} : vector<2x128xf32> to vector<2x32xf32>
    %238 = math.tanh %237 : vector<2x32xf32>
    %239 = vector.extract_strided_slice %236 {offsets = [0, 0], sizes = [2, 32], strides = [1, 1]} : vector<2x96xf32> to vector<2x32xf32>
    %240 = vector.extract_strided_slice %236 {offsets = [0, 32], sizes = [2, 32], strides = [1, 1]} : vector<2x96xf32> to vector<2x32xf32>
    %241 = vector.extract_strided_slice %236 {offsets = [0, 64], sizes = [2, 32], strides = [1, 1]} : vector<2x96xf32> to vector<2x32xf32>
    %242 = arith.mulf %240, %194 : vector<2x32xf32>
    %243 = arith.mulf %239, %238 : vector<2x32xf32>
    %244 = arith.addf %242, %243 : vector<2x32xf32>
    %245 = math.tanh %244 : vector<2x32xf32>
    %246 = arith.mulf %241, %245 : vector<2x32xf32>
    %247 = arith.index_cast %c4_i32 : i32 to index
    %c0_82 = arith.constant 0 : index
    %c0_83 = arith.constant 0 : index
    %248 = vector.load %arg5[%247, %c0_82, %c0_83] : memref<8x2x32xf32, #tpu.memory_space<vmem>>, vector<1x2x32xf32>
    %249 = vector.shape_cast %248 : vector<1x2x32xf32> to vector<2x32xf32>
    %250 = vector.shape_cast %246 : vector<2x32xf32> to vector<1x2x32xf32>
    tpu.vector_store %arg5[%247, %c0_82, %c0_83], %250 {strides = array<i32>} : memref<8x2x32xf32, #tpu.memory_space<vmem>>, vector<1x2x32xf32>,
    %c5_i32 = arith.constant 5 : i32
    %251 = arith.index_cast %c5_i32 : i32 to index
    %c0_84 = arith.constant 0 : index
    %c0_85 = arith.constant 0 : index
    %252 = vector.load %arg0[%251, %c0_84, %c0_85] : memref<8x2x128xf32, #tpu.memory_space<vmem>>, vector<1x2x128xf32>
    %253 = vector.shape_cast %252 : vector<1x2x128xf32> to vector<2x128xf32>
    %c0_86 = arith.constant 0 : index
    %c0_87 = arith.constant 0 : index
    %254 = vector.load %arg1[%c0_86, %c0_87] : memref<32x128xf32, #tpu.memory_space<vmem>>, vector<32x128xf32>
    %cst_88 = arith.constant dense<0.000000e+00> : vector<2x128xf32>
    %255 = tpu.matmul %222, %254, %cst_88 {dimension_numbers = #tpu.dot_dimension_numbers<[1], [0], [0], [1], [0, 0, 1, 1], [], []>} : vector<2x32xf32>, vector<32x128xf32>, vector<2x128xf32> -> vector<2x128xf32>
    %256 = arith.addf %253, %255 : vector<2x128xf32>
    %257 = vector.extract_strided_slice %256 {offsets = [0, 0], sizes = [2, 96], strides = [1, 1]} : vector<2x128xf32> to vector<2x96xf32>
    %258 = arith.negf %257 : vector<2x96xf32>
    %259 = math.exp %258 : vector<2x96xf32>
    %cst_89 = arith.constant 1.000000e+00 : f32
    %260 = vector.broadcast %cst_89 : f32 to vector<2x96xf32>
    %261 = arith.addf %260, %259 : vector<2x96xf32>
    %262 = arith.divf %260, %261 : vector<2x96xf32>
    %263 = vector.extract_strided_slice %256 {offsets = [0, 96], sizes = [2, 32], strides = [1, 1]} : vector<2x128xf32> to vector<2x32xf32>
    %264 = math.tanh %263 : vector<2x32xf32>
    %265 = vector.extract_strided_slice %262 {offsets = [0, 0], sizes = [2, 32], strides = [1, 1]} : vector<2x96xf32> to vector<2x32xf32>
    %266 = vector.extract_strided_slice %262 {offsets = [0, 32], sizes = [2, 32], strides = [1, 1]} : vector<2x96xf32> to vector<2x32xf32>
    %267 = vector.extract_strided_slice %262 {offsets = [0, 64], sizes = [2, 32], strides = [1, 1]} : vector<2x96xf32> to vector<2x32xf32>
    %268 = arith.mulf %266, %220 : vector<2x32xf32>
    %269 = arith.mulf %265, %264 : vector<2x32xf32>
    %270 = arith.addf %268, %269 : vector<2x32xf32>
    %271 = math.tanh %270 : vector<2x32xf32>
    %272 = arith.mulf %267, %271 : vector<2x32xf32>
    %c0_90 = arith.constant 0 : index
    %c0_91 = arith.constant 0 : index
    %273 = vector.load %arg2[%c0_90, %c0_91] : memref<32x128xf32, #tpu.memory_space<vmem>>, vector<32x128xf32>
    %cst_92 = arith.constant dense<0.000000e+00> : vector<2x128xf32>
    %274 = tpu.matmul %272, %273, %cst_92 {dimension_numbers = #tpu.dot_dimension_numbers<[1], [0], [0], [1], [0, 0, 1, 1], [], []>} : vector<2x32xf32>, vector<32x128xf32>, vector<2x128xf32> -> vector<2x128xf32>
    %c0_93 = arith.constant 0 : index
    %c0_94 = arith.constant 0 : index
    %275 = vector.load %arg4[%c0_93, %c0_94] : memref<32x128xf32, #tpu.memory_space<vmem>>, vector<32x128xf32>
    %cst_95 = arith.constant dense<0.000000e+00> : vector<2x128xf32>
    %276 = tpu.matmul %246, %275, %cst_95 {dimension_numbers = #tpu.dot_dimension_numbers<[1], [0], [0], [1], [0, 0, 1, 1], [], []>} : vector<2x32xf32>, vector<32x128xf32>, vector<2x128xf32> -> vector<2x128xf32>
    %277 = arith.addf %274, %276 : vector<2x128xf32>
    %c0_96 = arith.constant 0 : index
    %c0_97 = arith.constant 0 : index
    %278 = vector.load %arg3[%c0_96, %c0_97] : memref<1x128xf32, #tpu.memory_space<vmem>>, vector<1x128xf32>
    %279 = vector.broadcast %278 : vector<1x128xf32> to vector<2x128xf32>
    %280 = arith.addf %277, %279 : vector<2x128xf32>
    %281 = vector.extract_strided_slice %280 {offsets = [0, 0], sizes = [2, 96], strides = [1, 1]} : vector<2x128xf32> to vector<2x96xf32>
    %282 = arith.negf %281 : vector<2x96xf32>
    %283 = math.exp %282 : vector<2x96xf32>
    %cst_98 = arith.constant 1.000000e+00 : f32
    %284 = vector.broadcast %cst_98 : f32 to vector<2x96xf32>
    %285 = arith.addf %284, %283 : vector<2x96xf32>
    %286 = arith.divf %284, %285 : vector<2x96xf32>
    %287 = vector.extract_strided_slice %280 {offsets = [0, 96], sizes = [2, 32], strides = [1, 1]} : vector<2x128xf32> to vector<2x32xf32>
    %288 = math.tanh %287 : vector<2x32xf32>
    %289 = vector.extract_strided_slice %286 {offsets = [0, 0], sizes = [2, 32], strides = [1, 1]} : vector<2x96xf32> to vector<2x32xf32>
    %290 = vector.extract_strided_slice %286 {offsets = [0, 32], sizes = [2, 32], strides = [1, 1]} : vector<2x96xf32> to vector<2x32xf32>
    %291 = vector.extract_strided_slice %286 {offsets = [0, 64], sizes = [2, 32], strides = [1, 1]} : vector<2x96xf32> to vector<2x32xf32>
    %292 = arith.mulf %290, %244 : vector<2x32xf32>
    %293 = arith.mulf %289, %288 : vector<2x32xf32>
    %294 = arith.addf %292, %293 : vector<2x32xf32>
    %295 = math.tanh %294 : vector<2x32xf32>
    %296 = arith.mulf %291, %295 : vector<2x32xf32>
    %297 = arith.index_cast %c5_i32 : i32 to index
    %c0_99 = arith.constant 0 : index
    %c0_100 = arith.constant 0 : index
    %298 = vector.load %arg5[%297, %c0_99, %c0_100] : memref<8x2x32xf32, #tpu.memory_space<vmem>>, vector<1x2x32xf32>
    %299 = vector.shape_cast %298 : vector<1x2x32xf32> to vector<2x32xf32>
    %300 = vector.shape_cast %296 : vector<2x32xf32> to vector<1x2x32xf32>
    tpu.vector_store %arg5[%297, %c0_99, %c0_100], %300 {strides = array<i32>} : memref<8x2x32xf32, #tpu.memory_space<vmem>>, vector<1x2x32xf32>,
    %c6_i32 = arith.constant 6 : i32
    %301 = arith.index_cast %c6_i32 : i32 to index
    %c0_101 = arith.constant 0 : index
    %c0_102 = arith.constant 0 : index
    %302 = vector.load %arg0[%301, %c0_101, %c0_102] : memref<8x2x128xf32, #tpu.memory_space<vmem>>, vector<1x2x128xf32>
    %303 = vector.shape_cast %302 : vector<1x2x128xf32> to vector<2x128xf32>
    %c0_103 = arith.constant 0 : index
    %c0_104 = arith.constant 0 : index
    %304 = vector.load %arg1[%c0_103, %c0_104] : memref<32x128xf32, #tpu.memory_space<vmem>>, vector<32x128xf32>
    %cst_105 = arith.constant dense<0.000000e+00> : vector<2x128xf32>
    %305 = tpu.matmul %272, %304, %cst_105 {dimension_numbers = #tpu.dot_dimension_numbers<[1], [0], [0], [1], [0, 0, 1, 1], [], []>} : vector<2x32xf32>, vector<32x128xf32>, vector<2x128xf32> -> vector<2x128xf32>
    %306 = arith.addf %303, %305 : vector<2x128xf32>
    %307 = vector.extract_strided_slice %306 {offsets = [0, 0], sizes = [2, 96], strides = [1, 1]} : vector<2x128xf32> to vector<2x96xf32>
    %308 = arith.negf %307 : vector<2x96xf32>
    %309 = math.exp %308 : vector<2x96xf32>
    %cst_106 = arith.constant 1.000000e+00 : f32
    %310 = vector.broadcast %cst_106 : f32 to vector<2x96xf32>
    %311 = arith.addf %310, %309 : vector<2x96xf32>
    %312 = arith.divf %310, %311 : vector<2x96xf32>
    %313 = vector.extract_strided_slice %306 {offsets = [0, 96], sizes = [2, 32], strides = [1, 1]} : vector<2x128xf32> to vector<2x32xf32>
    %314 = math.tanh %313 : vector<2x32xf32>
    %315 = vector.extract_strided_slice %312 {offsets = [0, 0], sizes = [2, 32], strides = [1, 1]} : vector<2x96xf32> to vector<2x32xf32>
    %316 = vector.extract_strided_slice %312 {offsets = [0, 32], sizes = [2, 32], strides = [1, 1]} : vector<2x96xf32> to vector<2x32xf32>
    %317 = vector.extract_strided_slice %312 {offsets = [0, 64], sizes = [2, 32], strides = [1, 1]} : vector<2x96xf32> to vector<2x32xf32>
    %318 = arith.mulf %316, %270 : vector<2x32xf32>
    %319 = arith.mulf %315, %314 : vector<2x32xf32>
    %320 = arith.addf %318, %319 : vector<2x32xf32>
    %321 = math.tanh %320 : vector<2x32xf32>
    %322 = arith.mulf %317, %321 : vector<2x32xf32>
    %c0_107 = arith.constant 0 : index
    %c0_108 = arith.constant 0 : index
    %323 = vector.load %arg2[%c0_107, %c0_108] : memref<32x128xf32, #tpu.memory_space<vmem>>, vector<32x128xf32>
    %cst_109 = arith.constant dense<0.000000e+00> : vector<2x128xf32>
    %324 = tpu.matmul %322, %323, %cst_109 {dimension_numbers = #tpu.dot_dimension_numbers<[1], [0], [0], [1], [0, 0, 1, 1], [], []>} : vector<2x32xf32>, vector<32x128xf32>, vector<2x128xf32> -> vector<2x128xf32>
    %c0_110 = arith.constant 0 : index
    %c0_111 = arith.constant 0 : index
    %325 = vector.load %arg4[%c0_110, %c0_111] : memref<32x128xf32, #tpu.memory_space<vmem>>, vector<32x128xf32>
    %cst_112 = arith.constant dense<0.000000e+00> : vector<2x128xf32>
    %326 = tpu.matmul %296, %325, %cst_112 {dimension_numbers = #tpu.dot_dimension_numbers<[1], [0], [0], [1], [0, 0, 1, 1], [], []>} : vector<2x32xf32>, vector<32x128xf32>, vector<2x128xf32> -> vector<2x128xf32>
    %327 = arith.addf %324, %326 : vector<2x128xf32>
    %c0_113 = arith.constant 0 : index
    %c0_114 = arith.constant 0 : index
    %328 = vector.load %arg3[%c0_113, %c0_114] : memref<1x128xf32, #tpu.memory_space<vmem>>, vector<1x128xf32>
    %329 = vector.broadcast %328 : vector<1x128xf32> to vector<2x128xf32>
    %330 = arith.addf %327, %329 : vector<2x128xf32>
    %331 = vector.extract_strided_slice %330 {offsets = [0, 0], sizes = [2, 96], strides = [1, 1]} : vector<2x128xf32> to vector<2x96xf32>
    %332 = arith.negf %331 : vector<2x96xf32>
    %333 = math.exp %332 : vector<2x96xf32>
    %cst_115 = arith.constant 1.000000e+00 : f32
    %334 = vector.broadcast %cst_115 : f32 to vector<2x96xf32>
    %335 = arith.addf %334, %333 : vector<2x96xf32>
    %336 = arith.divf %334, %335 : vector<2x96xf32>
    %337 = vector.extract_strided_slice %330 {offsets = [0, 96], sizes = [2, 32], strides = [1, 1]} : vector<2x128xf32> to vector<2x32xf32>
    %338 = math.tanh %337 : vector<2x32xf32>
    %339 = vector.extract_strided_slice %336 {offsets = [0, 0], sizes = [2, 32], strides = [1, 1]} : vector<2x96xf32> to vector<2x32xf32>
    %340 = vector.extract_strided_slice %336 {offsets = [0, 32], sizes = [2, 32], strides = [1, 1]} : vector<2x96xf32> to vector<2x32xf32>
    %341 = vector.extract_strided_slice %336 {offsets = [0, 64], sizes = [2, 32], strides = [1, 1]} : vector<2x96xf32> to vector<2x32xf32>
    %342 = arith.mulf %340, %294 : vector<2x32xf32>
    %343 = arith.mulf %339, %338 : vector<2x32xf32>
    %344 = arith.addf %342, %343 : vector<2x32xf32>
    %345 = math.tanh %344 : vector<2x32xf32>
    %346 = arith.mulf %341, %345 : vector<2x32xf32>
    %347 = arith.index_cast %c6_i32 : i32 to index
    %c0_116 = arith.constant 0 : index
    %c0_117 = arith.constant 0 : index
    %348 = vector.load %arg5[%347, %c0_116, %c0_117] : memref<8x2x32xf32, #tpu.memory_space<vmem>>, vector<1x2x32xf32>
    %349 = vector.shape_cast %348 : vector<1x2x32xf32> to vector<2x32xf32>
    %350 = vector.shape_cast %346 : vector<2x32xf32> to vector<1x2x32xf32>
    tpu.vector_store %arg5[%347, %c0_116, %c0_117], %350 {strides = array<i32>} : memref<8x2x32xf32, #tpu.memory_space<vmem>>, vector<1x2x32xf32>,
    %c7_i32 = arith.constant 7 : i32
    %351 = arith.index_cast %c7_i32 : i32 to index
    %c0_118 = arith.constant 0 : index
    %c0_119 = arith.constant 0 : index
    %352 = vector.load %arg0[%351, %c0_118, %c0_119] : memref<8x2x128xf32, #tpu.memory_space<vmem>>, vector<1x2x128xf32>
    %353 = vector.shape_cast %352 : vector<1x2x128xf32> to vector<2x128xf32>
    %c0_120 = arith.constant 0 : index
    %c0_121 = arith.constant 0 : index
    %354 = vector.load %arg1[%c0_120, %c0_121] : memref<32x128xf32, #tpu.memory_space<vmem>>, vector<32x128xf32>
    %cst_122 = arith.constant dense<0.000000e+00> : vector<2x128xf32>
    %355 = tpu.matmul %322, %354, %cst_122 {dimension_numbers = #tpu.dot_dimension_numbers<[1], [0], [0], [1], [0, 0, 1, 1], [], []>} : vector<2x32xf32>, vector<32x128xf32>, vector<2x128xf32> -> vector<2x128xf32>
    %356 = arith.addf %353, %355 : vector<2x128xf32>
    %357 = vector.extract_strided_slice %356 {offsets = [0, 0], sizes = [2, 96], strides = [1, 1]} : vector<2x128xf32> to vector<2x96xf32>
    %358 = arith.negf %357 : vector<2x96xf32>
    %359 = math.exp %358 : vector<2x96xf32>
    %cst_123 = arith.constant 1.000000e+00 : f32
    %360 = vector.broadcast %cst_123 : f32 to vector<2x96xf32>
    %361 = arith.addf %360, %359 : vector<2x96xf32>
    %362 = arith.divf %360, %361 : vector<2x96xf32>
    %363 = vector.extract_strided_slice %356 {offsets = [0, 96], sizes = [2, 32], strides = [1, 1]} : vector<2x128xf32> to vector<2x32xf32>
    %364 = math.tanh %363 : vector<2x32xf32>
    %365 = vector.extract_strided_slice %362 {offsets = [0, 0], sizes = [2, 32], strides = [1, 1]} : vector<2x96xf32> to vector<2x32xf32>
    %366 = vector.extract_strided_slice %362 {offsets = [0, 32], sizes = [2, 32], strides = [1, 1]} : vector<2x96xf32> to vector<2x32xf32>
    %367 = vector.extract_strided_slice %362 {offsets = [0, 64], sizes = [2, 32], strides = [1, 1]} : vector<2x96xf32> to vector<2x32xf32>
    %368 = arith.mulf %366, %320 : vector<2x32xf32>
    %369 = arith.mulf %365, %364 : vector<2x32xf32>
    %370 = arith.addf %368, %369 : vector<2x32xf32>
    %371 = math.tanh %370 : vector<2x32xf32>
    %372 = arith.mulf %367, %371 : vector<2x32xf32>
    %c0_124 = arith.constant 0 : index
    %c0_125 = arith.constant 0 : index
    %373 = vector.load %arg2[%c0_124, %c0_125] : memref<32x128xf32, #tpu.memory_space<vmem>>, vector<32x128xf32>
    %cst_126 = arith.constant dense<0.000000e+00> : vector<2x128xf32>
    %374 = tpu.matmul %372, %373, %cst_126 {dimension_numbers = #tpu.dot_dimension_numbers<[1], [0], [0], [1], [0, 0, 1, 1], [], []>} : vector<2x32xf32>, vector<32x128xf32>, vector<2x128xf32> -> vector<2x128xf32>
    %c0_127 = arith.constant 0 : index
    %c0_128 = arith.constant 0 : index
    %375 = vector.load %arg4[%c0_127, %c0_128] : memref<32x128xf32, #tpu.memory_space<vmem>>, vector<32x128xf32>
    %cst_129 = arith.constant dense<0.000000e+00> : vector<2x128xf32>
    %376 = tpu.matmul %346, %375, %cst_129 {dimension_numbers = #tpu.dot_dimension_numbers<[1], [0], [0], [1], [0, 0, 1, 1], [], []>} : vector<2x32xf32>, vector<32x128xf32>, vector<2x128xf32> -> vector<2x128xf32>
    %377 = arith.addf %374, %376 : vector<2x128xf32>
    %c0_130 = arith.constant 0 : index
    %c0_131 = arith.constant 0 : index
    %378 = vector.load %arg3[%c0_130, %c0_131] : memref<1x128xf32, #tpu.memory_space<vmem>>, vector<1x128xf32>
    %379 = vector.broadcast %378 : vector<1x128xf32> to vector<2x128xf32>
    %380 = arith.addf %377, %379 : vector<2x128xf32>
    %381 = vector.extract_strided_slice %380 {offsets = [0, 0], sizes = [2, 96], strides = [1, 1]} : vector<2x128xf32> to vector<2x96xf32>
    %382 = arith.negf %381 : vector<2x96xf32>
    %383 = math.exp %382 : vector<2x96xf32>
    %cst_132 = arith.constant 1.000000e+00 : f32
    %384 = vector.broadcast %cst_132 : f32 to vector<2x96xf32>
    %385 = arith.addf %384, %383 : vector<2x96xf32>
    %386 = arith.divf %384, %385 : vector<2x96xf32>
    %387 = vector.extract_strided_slice %380 {offsets = [0, 96], sizes = [2, 32], strides = [1, 1]} : vector<2x128xf32> to vector<2x32xf32>
    %388 = math.tanh %387 : vector<2x32xf32>
    %389 = vector.extract_strided_slice %386 {offsets = [0, 0], sizes = [2, 32], strides = [1, 1]} : vector<2x96xf32> to vector<2x32xf32>
    %390 = vector.extract_strided_slice %386 {offsets = [0, 32], sizes = [2, 32], strides = [1, 1]} : vector<2x96xf32> to vector<2x32xf32>
    %391 = vector.extract_strided_slice %386 {offsets = [0, 64], sizes = [2, 32], strides = [1, 1]} : vector<2x96xf32> to vector<2x32xf32>
    %392 = arith.mulf %390, %344 : vector<2x32xf32>
    %393 = arith.mulf %389, %388 : vector<2x32xf32>
    %394 = arith.addf %392, %393 : vector<2x32xf32>
    %395 = math.tanh %394 : vector<2x32xf32>
    %396 = arith.mulf %391, %395 : vector<2x32xf32>
    %397 = arith.index_cast %c7_i32 : i32 to index
    %c0_133 = arith.constant 0 : index
    %c0_134 = arith.constant 0 : index
    %398 = vector.load %arg5[%397, %c0_133, %c0_134] : memref<8x2x32xf32, #tpu.memory_space<vmem>>, vector<1x2x32xf32>
    %399 = vector.shape_cast %398 : vector<1x2x32xf32> to vector<2x32xf32>
    %400 = vector.shape_cast %396 : vector<2x32xf32> to vector<1x2x32xf32>
    tpu.vector_store %arg5[%397, %c0_133, %c0_134], %400 {strides = array<i32>} : memref<8x2x32xf32, #tpu.memory_space<vmem>>, vector<1x2x32xf32>,
    %c8_i32 = arith.constant 8 : i32
    return
  }
}

module attributes {stable_mosaic.version = 11 : i64} {
  func.func @_mlp_kernel(%arg0: i32, %arg1: memref<16x32xf32, #tpu.memory_space<vmem>>, %arg2: memref<32x256xf32, #tpu.memory_space<vmem>>, %arg3: memref<1x256xf32, #tpu.memory_space<vmem>>, %arg4: memref<256x128xf32, #tpu.memory_space<vmem>>, %arg5: memref<1x128xf32, #tpu.memory_space<vmem>>, %arg6: memref<128x64xf32, #tpu.memory_space<vmem>>, %arg7: memref<1x64xf32, #tpu.memory_space<vmem>>, %arg8: memref<64x32xf32, #tpu.memory_space<vmem>>, %arg9: memref<1x32xf32, #tpu.memory_space<vmem>>, %arg10: memref<32x4xf32, #tpu.memory_space<vmem>>, %arg11: memref<1x4xf32, #tpu.memory_space<vmem>>, %arg12: memref<16x4xf32, #tpu.memory_space<vmem>>) attributes {dimension_semantics = [#tpu.dimension_semantics<parallel>], iteration_bounds = array<i64: 1>, scalar_prefetch = 0 : i64, scratch_operands = 0 : i64, tpu.core_type = #tpu.core_type<tc>, window_params = [{transform_indices = @transform_0, window_bounds = array<i64: 16, 32>}, {pipeline_mode = #tpu.pipeline_mode<synchronous>, transform_indices = @transform_1, window_bounds = array<i64: 32, 256>}, {pipeline_mode = #tpu.pipeline_mode<synchronous>, transform_indices = @transform_2, window_bounds = array<i64: 1, 256>}, {pipeline_mode = #tpu.pipeline_mode<synchronous>, transform_indices = @transform_3, window_bounds = array<i64: 256, 128>}, {pipeline_mode = #tpu.pipeline_mode<synchronous>, transform_indices = @transform_4, window_bounds = array<i64: 1, 128>}, {pipeline_mode = #tpu.pipeline_mode<synchronous>, transform_indices = @transform_5, window_bounds = array<i64: 128, 64>}, {pipeline_mode = #tpu.pipeline_mode<synchronous>, transform_indices = @transform_6, window_bounds = array<i64: 1, 64>}, {pipeline_mode = #tpu.pipeline_mode<synchronous>, transform_indices = @transform_7, window_bounds = array<i64: 64, 32>}, {pipeline_mode = #tpu.pipeline_mode<synchronous>, transform_indices = @transform_8, window_bounds = array<i64: 1, 32>}, {pipeline_mode = #tpu.pipeline_mode<synchronous>, transform_indices = @transform_9, window_bounds = array<i64: 32, 4>}, {pipeline_mode = #tpu.pipeline_mode<synchronous>, transform_indices = @transform_10, window_bounds = array<i64: 1, 4>}, {transform_indices = @transform_11, window_bounds = array<i64: 16, 4>}]} {
    %c0 = arith.constant 0 : index
    %c0_0 = arith.constant 0 : index
    %0 = vector.load %arg1[%c0, %c0_0] : memref<16x32xf32, #tpu.memory_space<vmem>>, vector<16x32xf32>
    %c0_1 = arith.constant 0 : index
    %c0_2 = arith.constant 0 : index
    %1 = vector.load %arg2[%c0_1, %c0_2] : memref<32x256xf32, #tpu.memory_space<vmem>>, vector<32x256xf32>
    %cst = arith.constant dense<0.000000e+00> : vector<16x256xf32>
    %2 = tpu.matmul %0, %1, %cst {dimension_numbers = #tpu.dot_dimension_numbers<[1], [0], [0], [1], [0, 0, 1, 1], [], []>} : vector<16x32xf32>, vector<32x256xf32>, vector<16x256xf32> -> vector<16x256xf32>
    %c0_3 = arith.constant 0 : index
    %c0_4 = arith.constant 0 : index
    %3 = vector.load %arg3[%c0_3, %c0_4] : memref<1x256xf32, #tpu.memory_space<vmem>>, vector<1x256xf32>
    %4 = vector.broadcast %3 : vector<1x256xf32> to vector<16x256xf32>
    %5 = arith.addf %2, %4 : vector<16x256xf32>
    %cst_5 = arith.constant 0.000000e+00 : f32
    %6 = vector.broadcast %cst_5 : f32 to vector<16x256xf32>
    %7 = arith.maximumf %5, %6 : vector<16x256xf32>
    %c0_6 = arith.constant 0 : index
    %c0_7 = arith.constant 0 : index
    %8 = vector.load %arg4[%c0_6, %c0_7] : memref<256x128xf32, #tpu.memory_space<vmem>>, vector<256x128xf32>
    %cst_8 = arith.constant dense<0.000000e+00> : vector<16x128xf32>
    %9 = tpu.matmul %7, %8, %cst_8 {dimension_numbers = #tpu.dot_dimension_numbers<[1], [0], [0], [1], [0, 0, 1, 1], [], []>} : vector<16x256xf32>, vector<256x128xf32>, vector<16x128xf32> -> vector<16x128xf32>
    %c0_9 = arith.constant 0 : index
    %c0_10 = arith.constant 0 : index
    %10 = vector.load %arg5[%c0_9, %c0_10] : memref<1x128xf32, #tpu.memory_space<vmem>>, vector<1x128xf32>
    %11 = vector.broadcast %10 : vector<1x128xf32> to vector<16x128xf32>
    %12 = arith.addf %9, %11 : vector<16x128xf32>
    %cst_11 = arith.constant 0.000000e+00 : f32
    %13 = vector.broadcast %cst_11 : f32 to vector<16x128xf32>
    %14 = arith.maximumf %12, %13 : vector<16x128xf32>
    %c0_12 = arith.constant 0 : index
    %c0_13 = arith.constant 0 : index
    %15 = vector.load %arg6[%c0_12, %c0_13] : memref<128x64xf32, #tpu.memory_space<vmem>>, vector<128x64xf32>
    %cst_14 = arith.constant dense<0.000000e+00> : vector<16x64xf32>
    %16 = tpu.matmul %14, %15, %cst_14 {dimension_numbers = #tpu.dot_dimension_numbers<[1], [0], [0], [1], [0, 0, 1, 1], [], []>} : vector<16x128xf32>, vector<128x64xf32>, vector<16x64xf32> -> vector<16x64xf32>
    %c0_15 = arith.constant 0 : index
    %c0_16 = arith.constant 0 : index
    %17 = vector.load %arg7[%c0_15, %c0_16] : memref<1x64xf32, #tpu.memory_space<vmem>>, vector<1x64xf32>
    %18 = vector.broadcast %17 : vector<1x64xf32> to vector<16x64xf32>
    %19 = arith.addf %16, %18 : vector<16x64xf32>
    %cst_17 = arith.constant 0.000000e+00 : f32
    %20 = vector.broadcast %cst_17 : f32 to vector<16x64xf32>
    %21 = arith.maximumf %19, %20 : vector<16x64xf32>
    %c0_18 = arith.constant 0 : index
    %c0_19 = arith.constant 0 : index
    %22 = vector.load %arg8[%c0_18, %c0_19] : memref<64x32xf32, #tpu.memory_space<vmem>>, vector<64x32xf32>
    %cst_20 = arith.constant dense<0.000000e+00> : vector<16x32xf32>
    %23 = tpu.matmul %21, %22, %cst_20 {dimension_numbers = #tpu.dot_dimension_numbers<[1], [0], [0], [1], [0, 0, 1, 1], [], []>} : vector<16x64xf32>, vector<64x32xf32>, vector<16x32xf32> -> vector<16x32xf32>
    %c0_21 = arith.constant 0 : index
    %c0_22 = arith.constant 0 : index
    %24 = vector.load %arg9[%c0_21, %c0_22] : memref<1x32xf32, #tpu.memory_space<vmem>>, vector<1x32xf32>
    %25 = vector.broadcast %24 : vector<1x32xf32> to vector<16x32xf32>
    %26 = arith.addf %23, %25 : vector<16x32xf32>
    %cst_23 = arith.constant 0.000000e+00 : f32
    %27 = vector.broadcast %cst_23 : f32 to vector<16x32xf32>
    %28 = arith.maximumf %26, %27 : vector<16x32xf32>
    %c0_24 = arith.constant 0 : index
    %c0_25 = arith.constant 0 : index
    %29 = vector.load %arg10[%c0_24, %c0_25] : memref<32x4xf32, #tpu.memory_space<vmem>>, vector<32x4xf32>
    %cst_26 = arith.constant dense<0.000000e+00> : vector<16x4xf32>
    %30 = tpu.matmul %28, %29, %cst_26 {dimension_numbers = #tpu.dot_dimension_numbers<[1], [0], [0], [1], [0, 0, 1, 1], [], []>} : vector<16x32xf32>, vector<32x4xf32>, vector<16x4xf32> -> vector<16x4xf32>
    %c0_27 = arith.constant 0 : index
    %c0_28 = arith.constant 0 : index
    %31 = vector.load %arg11[%c0_27, %c0_28] : memref<1x4xf32, #tpu.memory_space<vmem>>, vector<1x4xf32>
    %32 = vector.broadcast %31 : vector<1x4xf32> to vector<16x4xf32>
    %33 = arith.addf %30, %32 : vector<16x4xf32>
    %c0_29 = arith.constant 0 : index
    %c0_30 = arith.constant 0 : index
    %34 = vector.load %arg12[%c0_29, %c0_30] : memref<16x4xf32, #tpu.memory_space<vmem>>, vector<16x4xf32>
    tpu.vector_store %arg12[%c0_29, %c0_30], %33 {strides = array<i32>} : memref<16x4xf32, #tpu.memory_space<vmem>>, vector<16x4xf32>,
    return
  }
  func.func @transform_0(%arg0: i32) -> (i32, i32) {
    %c0_i32 = arith.constant 0 : i32
    %c0_i32_0 = arith.constant 0 : i32
    return %arg0, %c0_i32 : i32, i32
  }
  func.func @transform_1(%arg0: i32) -> (i32, i32) {
    %c0_i32 = arith.constant 0 : i32
    %c0_i32_0 = arith.constant 0 : i32
    %c0_i32_1 = arith.constant 0 : i32
    return %c0_i32, %c0_i32_0 : i32, i32
  }
  func.func @transform_2(%arg0: i32) -> (i32, i32) {
    %c0_i32 = arith.constant 0 : i32
    %c0_i32_0 = arith.constant 0 : i32
    %c0_i32_1 = arith.constant 0 : i32
    return %c0_i32, %c0_i32_0 : i32, i32
  }
  func.func @transform_3(%arg0: i32) -> (i32, i32) {
    %c0_i32 = arith.constant 0 : i32
    %c0_i32_0 = arith.constant 0 : i32
    %c0_i32_1 = arith.constant 0 : i32
    return %c0_i32, %c0_i32_0 : i32, i32
  }
  func.func @transform_4(%arg0: i32) -> (i32, i32) {
    %c0_i32 = arith.constant 0 : i32
    %c0_i32_0 = arith.constant 0 : i32
    %c0_i32_1 = arith.constant 0 : i32
    return %c0_i32, %c0_i32_0 : i32, i32
  }
  func.func @transform_5(%arg0: i32) -> (i32, i32) {
    %c0_i32 = arith.constant 0 : i32
    %c0_i32_0 = arith.constant 0 : i32
    %c0_i32_1 = arith.constant 0 : i32
    return %c0_i32, %c0_i32_0 : i32, i32
  }
  func.func @transform_6(%arg0: i32) -> (i32, i32) {
    %c0_i32 = arith.constant 0 : i32
    %c0_i32_0 = arith.constant 0 : i32
    %c0_i32_1 = arith.constant 0 : i32
    return %c0_i32, %c0_i32_0 : i32, i32
  }
  func.func @transform_7(%arg0: i32) -> (i32, i32) {
    %c0_i32 = arith.constant 0 : i32
    %c0_i32_0 = arith.constant 0 : i32
    %c0_i32_1 = arith.constant 0 : i32
    return %c0_i32, %c0_i32_0 : i32, i32
  }
  func.func @transform_8(%arg0: i32) -> (i32, i32) {
    %c0_i32 = arith.constant 0 : i32
    %c0_i32_0 = arith.constant 0 : i32
    %c0_i32_1 = arith.constant 0 : i32
    return %c0_i32, %c0_i32_0 : i32, i32
  }
  func.func @transform_9(%arg0: i32) -> (i32, i32) {
    %c0_i32 = arith.constant 0 : i32
    %c0_i32_0 = arith.constant 0 : i32
    %c0_i32_1 = arith.constant 0 : i32
    return %c0_i32, %c0_i32_0 : i32, i32
  }
  func.func @transform_10(%arg0: i32) -> (i32, i32) {
    %c0_i32 = arith.constant 0 : i32
    %c0_i32_0 = arith.constant 0 : i32
    %c0_i32_1 = arith.constant 0 : i32
    return %c0_i32, %c0_i32_0 : i32, i32
  }
  func.func @transform_11(%arg0: i32) -> (i32, i32) {
    %c0_i32 = arith.constant 0 : i32
    %c0_i32_0 = arith.constant 0 : i32
    return %arg0, %c0_i32 : i32, i32
  }
}

</mosaic_0001>

<bundles_post_ra>
// kernel: generator_forward.3
= control target key start
LH: loop header
LB: loop body
LE: loop exit
PB: predicated region body
PF: predicated region fallthrough
CT: control target
= control target key end

     0   :  { %16 = vsyncpa [#allocation3], 0  ;;  %s386_s20 = smov [#allocation2]   ;;  %s387_s22 = smov 256   ;;  %s665_s0 = inlined_call_operand.vmem [shape: f32[16,32], index: 0, kind: input, shape index: {}]   ;;  %s666_s1 = inlined_call_operand.hbm [shape: f32[32,256], index: 1, kind: input, shape index: {}]   ;;  %s667_s2 = inlined_call_operand.vmem [shape: f32[1,256], index: 2, kind: input, shape index: {}]   ;;  %s668_s3 = inlined_call_operand.vmem [shape: f32[256,128], index: 3, kind: input, shape index: {}]   ;;  %s669_s4 = inlined_call_operand.vmem [shape: f32[1,128], index: 4, kind: input, shape index: {}]   ;;  %s670_s5 = inlined_call_operand.vmem [shape: f32[128,64], index: 5, kind: input, shape index: {}]   ;;  %s671_s6 = inlined_call_operand.vmem [shape: f32[1,64], index: 6, kind: input, shape index: {}]   ;;  %s672_s7 = inlined_call_operand.vmem [shape: f32[64,32], index: 7, kind: input, shape index: {}]   ;;  %s673_s8 = inlined_call_operand.vmem [shape: f32[1,32], index: 8, kind: input, shape index: {}]   ;;  %s674_s9 = inlined_call_operand.vmem [shape: f32[32,4], index: 9, kind: input, shape index: {}]   ;;  %s675_s10 = inlined_call_operand.vmem [shape: f32[1,4], index: 10, kind: input, shape index: {}]   ;;  %s676_s11 = inlined_call_operand.vmem [shape: f32[16,4], index: 11, kind: output, shape index: {}]  }
   0x1   :  { %s23_s19 = sshll.u32 %s666_s1, 4  ;;  %s25_s21 = sshll.u32 %s386_s20, 4  ;;  %s24_s19 = int_to_ptr.hbm [resolvable:$true] %s23_s19  ;;  %s26_s21 = int_to_ptr.vmem [resolvable:$true] %s25_s21 }
   0x2   :  { %s388_s23 = smov 16  }
   0x3   :  { %31 = dma.hbm_to_vmem [thread:$0]  %s24_s19, 1024, %s26_s21, [#allocation3], %s387_s22, %s387_s22, %s388_s23  }
   0x4   :  { %384 = dma.done.wait [#allocation3], 1024  }
   0x5   :  { %385 = vsyncadd [#allocation3], 4294966272  ;;  %v62_v0 = vld [vmem:[#allocation2 + $0x30] sm:$0xff]  ;;  %v60_v1 = vld [vmem:[#allocation2 + $0x20] sm:$0xff]  ;;  %vm70_vm0 = vcmask 261120   ;;  %vm268_vm1 = vcmask 523264  }
   0x6   :  { %v63_v2 = vld [vmem:[#allocation2 + $0x38] sm:$0xff]  ;;  %89 = vmatpush.msra.mxu0 %v62_v0  ;;  %v61_v3 = vld [vmem:[#allocation2 + $0x28] sm:$0xff]  ;;  %v58_v4 = vld [vmem:[#allocation2 + $0x10] sm:$0xff]  ;;  %vm337_vm2 = vcmask 31744  }
   0x7   :  { %112 = vmatpush.msra.mxu1 %v63_v2  ;;  %v59_v5 = vld [vmem:[#allocation2 + $0x18] sm:$0xff]  ;;  %v141_v7 = vld [vmem:[%s668_s3 + $0x70] sm:$0xff]  ;;  %v56_v8 = vld [vmem:[#allocation2] sm:$0xff] }
   0x8   :  { %90 = vmatpush.msra.mxu0 %v60_v1  ;;  %v142_v6 = vld [vmem:[%s668_s3 + $0x78] sm:$0xff]  ;;  %v57_v9 = vld [vmem:[#allocation2 + $0x8] sm:$0xff]  ;;  %v54_v11 = vld [vmem:[%s665_s0] sm:$0xff] }
   0x9   :  { %113 = vmatpush.msra.mxu1 %v61_v3  ;;  %163 = vmatpush.msra.mxu2 %v142_v6  ;;  %v158_v10 = vld [vmem:[%s668_s3 + $0xf8] sm:$0xff]  ;;  %v140_v12 = vld [vmem:[%s668_s3 + $0x68] sm:$0xff]  ;;  %v157_v13 = vld [vmem:[%s668_s3 + $0xf0] sm:$0xff] }
   0xa   :  { %91 = vmatpush.msra.mxu0 %v58_v4  ;;  %186 = vmatpush.msra.mxu3 %v158_v10  ;;  %v139_v14 = vld [vmem:[%s668_s3 + $0x60] sm:$0xff]  ;;  %v156_v15 = vld [vmem:[%s668_s3 + $0xe8] sm:$0xff]  ;;  %v138_v16 = vld [vmem:[%s668_s3 + $0x58] sm:$0xff] }
   0xb   :  { %114 = vmatpush.msra.mxu1 %v59_v5  ;;  %164 = vmatpush.msra.mxu2 %v141_v7  ;;  %v155_v17 = vld [vmem:[%s668_s3 + $0xe0] sm:$0xff]  ;;  %v137_v18 = vld [vmem:[%s668_s3 + $0x50] sm:$0xff]  ;;  %v154_v19 = vld [vmem:[%s668_s3 + $0xd8] sm:$0xff] }
   0xc   :  { %92 = vmatpush.msra.mxu0 %v56_v8  ;;  %187 = vmatpush.msra.mxu3 %v157_v13  ;;  %v55_v20 = vld [vmem:[%s665_s0 + $0x8] sm:$0xff]  ;;  %v153_v22 = vld [vmem:[%s668_s3 + $0xd0] sm:$0xff]  ;;  %v135_v23 = vld [vmem:[%s668_s3 + $0x40] sm:$0xff] }
   0xd   :  { %115 = vmatpush.msra.mxu1 %v57_v9  ;;  %345 = vmatmul.msk.f32.vlgmr.msra.gmra.mxu0 %vm70_vm0, %v54_v11  ;;  %v136_v21 = vld [vmem:[%s668_s3 + $0x48] sm:$0xff]  ;;  %v134_v25 = vld [vmem:[%s668_s3 + $0x38] sm:$0xff]  ;;  %v151_v26 = vld [vmem:[%s668_s3 + $0xc0] sm:$0xff] }
   0xe   :  { %347 = vmatmul.msk.f32.vlgmr.msra.gmra.mxu1 %vm70_vm0, %v54_v11  ;;  %165 = vmatpush.msra.mxu2 %v140_v12  ;;  %v152_v24 = vld [vmem:[%s668_s3 + $0xc8] sm:$0xff]  ;;  %v133_v27 = vld [vmem:[%s668_s3 + $0x30] sm:$0xff]  ;;  %v150_v28 = vld [vmem:[%s668_s3 + $0xb8] sm:$0xff] }
   0xf   :  { %188 = vmatpush.msra.mxu3 %v156_v15  ;;  %v132_v29 = vld [vmem:[%s668_s3 + $0x28] sm:$0xff]  ;;  %v149_v30 = vld [vmem:[%s668_s3 + $0xb0] sm:$0xff]  ;;  %v131_v31 = vld [vmem:[%s668_s3 + $0x20] sm:$0xff] }
  0x10   :  { %166 = vmatpush.msra.mxu2 %v139_v14  ;;  %v148_v32 = vld [vmem:[%s668_s3 + $0xa8] sm:$0xff]  ;;  %v130_v33 = vld [vmem:[%s668_s3 + $0x18] sm:$0xff]  ;;  %v147_v34 = vld [vmem:[%s668_s3 + $0xa0] sm:$0xff] }
  0x11   :  { %189 = vmatpush.msra.mxu3 %v155_v17  ;;  %v129_v35 = vld [vmem:[%s668_s3 + $0x10] sm:$0xff]  ;;  %v146_v36 = vld [vmem:[%s668_s3 + $0x98] sm:$0xff]  ;;  %v128_v37 = vld [vmem:[%s668_s3 + $0x8] sm:$0xff] }
  0x12   :  { %167 = vmatpush.msra.mxu2 %v138_v16  ;;  %v145_v38 = vld [vmem:[%s668_s3 + $0x90] sm:$0xff]  ;;  %v127_v39 = vld [vmem:[%s668_s3] sm:$0xff]  ;;  %v144_v40 = vld [vmem:[%s668_s3 + $0x88] sm:$0xff] }
  0x13   :  { %190 = vmatpush.msra.mxu3 %v154_v19  ;;  %v143_v41 = vld [vmem:[%s668_s3 + $0x80] sm:$0xff]  ;;  %v226_v42 = vld [vmem:[%s670_s5 + $0x78] sm:$0xff]  ;;  %v225_v43 = vld [vmem:[%s670_s5 + $0x70] sm:$0xff] }
  0x14   :  { %168 = vmatpush.msra.mxu2 %v137_v18  ;;  %231 = vmatpush.msrb.mxu0 %v226_v42  ;;  %v224_v44 = vld [vmem:[%s670_s5 + $0x68] sm:$0xff]  ;;  %v223_v45 = vld [vmem:[%s670_s5 + $0x60] sm:$0xff]  ;;  %v222_v46 = vld [vmem:[%s670_s5 + $0x58] sm:$0xff] }
  0x15   :  { %346 = vmatmul.msk.f32.gmra.mxu0 %vm70_vm0, %v55_v20  ;;  %191 = vmatpush.msra.mxu3 %v153_v22  ;;  %v221_v47 = vld [vmem:[%s670_s5 + $0x50] sm:$0xff]  ;;  %v220_v48 = vld [vmem:[%s670_s5 + $0x48] sm:$0xff]  ;;  %v219_v49 = vld [vmem:[%s670_s5 + $0x40] sm:$0xff] }
  0x16   :  { %348 = vmatmul.msk.f32.gmra.mxu1 %vm70_vm0, %v55_v20  ;;  %169 = vmatpush.msra.mxu2 %v136_v21  ;;  %v64_v50 = vld [vmem:[%s667_s2] sm:$0x3]  ;;  %v218_v51 = vld [vmem:[%s670_s5 + $0x38] sm:$0xff]  ;;  %v217_v54 = vld [vmem:[%s670_s5 + $0x30] sm:$0xff] }
  0x17   :  { %192 = vmatpush.msra.mxu3 %v152_v24  ;;  %232 = vmatpush.msrb.mxu0 %v225_v43  ;;  %v66_v52 = vperm.slane %v64_v50, 0  ;;  %v67_v53 = vperm.slane %v64_v50, 1  ;;  %v216_v55 = vld [vmem:[%s670_s5 + $0x28] sm:$0xff]  ;;  %v215_v60 = vld [vmem:[%s670_s5 + $0x20] sm:$0xff]  ;;  %v214_v5 = vld [vmem:[%s670_s5 + $0x18] sm:$0xff] }
  0x18   :  { %170 = vmatpush.msra.mxu2 %v135_v23  ;;  %v213_v6 = vld [vmem:[%s670_s5 + $0x10] sm:$0xff]  ;;  %v212_v7 = vld [vmem:[%s670_s5 + $0x8] sm:$0xff]  ;;  %v211_v8 = vld [vmem:[%s670_s5] sm:$0xff] }
  0x19   :  { %193 = vmatpush.msra.mxu3 %v151_v26  ;;  %233 = vmatpush.msrb.mxu0 %v224_v44  ;;  %v263_v9 = vld [vmem:[%s672_s7 + $0x38] sm:$0xff]  ;;  %v262_v10 = vld [vmem:[%s672_s7 + $0x30] sm:$0xff]  ;;  %v261_v11 = vld [vmem:[%s672_s7 + $0x28] sm:$0xff] }
  0x1a   :  { %171 = vmatpush.msra.mxu2 %v134_v25  ;;  %283 = vmatpush.msrb.mxu1 %v263_v9  ;;  %v260_v12 = vld [vmem:[%s672_s7 + $0x20] sm:$0xff]  ;;  %v259_v13 = vld [vmem:[%s672_s7 + $0x18] sm:$0xff]  ;;  %v258_v14 = vld [vmem:[%s672_s7 + $0x10] sm:$0xff] }
  0x1b   :  { %194 = vmatpush.msra.mxu3 %v150_v28  ;;  %234 = vmatpush.msrb.mxu0 %v223_v45  ;;  %v356_v15 = vld [vmem:[%s669_s4] ss:$0 sm:$0xff]  ;;  %v257_v26 = vld [vmem:[%s672_s7 + $0x8] sm:$0xff]  ;;  %v303_v28 = vld [vmem:[%s674_s9 + $0x18] sm:$0xff] }
  0x1c   :  { %172 = vmatpush.msra.mxu2 %v133_v27  ;;  %284 = vmatpush.msrb.mxu1 %v262_v10  ;;  %v256_v27 = vld [vmem:[%s672_s7] sm:$0xff] }
  0x1d   :  { %195 = vmatpush.msra.mxu3 %v149_v30  ;;  %235 = vmatpush.msrb.mxu0 %v222_v46  ;;  %v301_v30 = vld [vmem:[%s674_s9 + $0x8] sm:$0xff]  ;;  %v359_v46 = vld [vmem:[%s675_s10] ss:$0 sm:$0xff] }
  0x1e   :  { %173 = vmatpush.msra.mxu2 %v132_v29  ;;  %285 = vmatpush.msrb.mxu1 %v261_v11  ;;  %v302_v29 = vld [vmem:[%s674_s9 + $0x10] sm:$0xff] }
  0x1f   :  { %196 = vmatpush.msra.mxu3 %v148_v32  ;;  %236 = vmatpush.msrb.mxu0 %v221_v47 }
  0x20   :  { %174 = vmatpush.msra.mxu2 %v131_v31  ;;  %286 = vmatpush.msrb.mxu1 %v260_v12  ;;  %v357_v31 = vld [vmem:[%s671_s6] ss:$0 sm:$0xff] }
  0x21   :  { %197 = vmatpush.msra.mxu3 %v147_v34  ;;  %237 = vmatpush.msrb.mxu0 %v220_v48 }
  0x22   :  { %175 = vmatpush.msra.mxu2 %v130_v33  ;;  %287 = vmatpush.msrb.mxu1 %v259_v13 }
  0x23   :  { %198 = vmatpush.msra.mxu3 %v146_v36  ;;  %238 = vmatpush.msrb.mxu0 %v219_v49 }
  0x24   :  { %176 = vmatpush.msra.mxu2 %v129_v35  ;;  %288 = vmatpush.msrb.mxu1 %v258_v14 }
  0x25   :  { %199 = vmatpush.msra.mxu3 %v145_v38  ;;  %239 = vmatpush.msrb.mxu0 %v218_v51  ;;  %v300_v38 = vld [vmem:[%s674_s9] sm:$0xff] }
  0x26   :  { %177 = vmatpush.msra.mxu2 %v128_v37  ;;  %289 = vmatpush.msrb.mxu1 %v257_v26 }
  0x27   :  { %200 = vmatpush.msra.mxu3 %v144_v40  ;;  %240 = vmatpush.msrb.mxu0 %v217_v54 }
  0x28   :  { %178 = vmatpush.msra.mxu2 %v127_v39  ;;  %290 = vmatpush.msrb.mxu1 %v256_v27  ;;  %v358_v39 = vld [vmem:[%s673_s8] ss:$0 sm:$0xff] }
  0x29   :  { %201 = vmatpush.msra.mxu3 %v143_v41  ;;  %241 = vmatpush.msrb.mxu0 %v216_v55 }
  0x2a   :  { %326 = vmatpush.msra.mxu1 %v303_v28 }
  0x2b   :  { %242 = vmatpush.msrb.mxu0 %v215_v60 }
  0x2c   :  { %327 = vmatpush.msra.mxu1 %v302_v29 }
  0x2d   :  { %243 = vmatpush.msrb.mxu0 %v214_v5 }
  0x2e   :  { %328 = vmatpush.msra.mxu1 %v301_v30 }
  0x2f   :  { %244 = vmatpush.msrb.mxu0 %v213_v6 }
  0x30   :  { %329 = vmatpush.msra.mxu1 %v300_v38 }
  0x31   :  { %245 = vmatpush.msrb.mxu0 %v212_v7 }
  0x33   :  { %246 = vmatpush.msrb.mxu0 %v211_v8 }
  0x8a   :  { %v94_v56 = vpop.f32.mrf.mxu0 }
  0x8b   :  { %v117_v57 = vpop.f32.mrf.mxu1  ;;  %v95_v58 = vadd.f32 %v94_v56, %v66_v52 }
  0x8c   :  { %v118_v59 = vadd.f32 %v117_v57, %v67_v53 }
  0x8d   :  { %v123_v61 = vmax.f32 %v95_v58, 0.0 }
  0x8e   :  { %v124_v62 = vmax.f32 %v118_v59, 0.0 }
  0x8f   :  { %179 = vmatmul.f32.vlgmr.msra.gmra.mxu2 %v123_v61 }
  0x90   :  { %202 = vmatmul.f32.vlgmr.msra.gmra.mxu3 %v124_v62 }
  0x92   :  { %v97_v63 = vpop.f32.mrf.mxu0 }
  0x93   :  { %v120_v0 = vpop.f32.mrf.mxu1  ;;  %v98_v1 = vadd.f32 %v97_v63, %v66_v52 }
  0x94   :  { %v121_v2 = vadd.f32 %v120_v0, %v67_v53 }
  0x95   :  { %v125_v3 = vmax.f32 %v98_v1, 0.0 }
  0x96   :  { %v126_v4 = vmax.f32 %v121_v2, 0.0 }
  0x97   :  { %182 = vmatmul.f32.gmra.mxu2 %v125_v3 }
  0x98   :  { %205 = vmatmul.f32.gmra.mxu3 %v126_v4 }
 0x112   :  { %v180_v16 = vpop.f32.mrf.mxu2 }
 0x113   :  { %v203_v17 = vpop.f32.mrf.mxu3  ;;  %v181_v18 = vadd.f32 %v356_v15, %v180_v16 }
 0x115   :  { %v204_v19 = vadd.f32 %v203_v17, %v181_v18 }
 0x117   :  { %v209_v20 = vmax.f32 %v204_v19, 0.0 }
 0x119   :  { %247 = vmatmul.f32.vlgmr.msrb.gmra.mxu0 %v209_v20 }
 0x11a   :  { %v183_v21 = vpop.f32.mrf.mxu2 }
 0x11b   :  { %v206_v22 = vpop.f32.mrf.mxu3  ;;  %v184_v23 = vadd.f32 %v356_v15, %v183_v21 }
 0x11d   :  { %v207_v24 = vadd.f32 %v206_v22, %v184_v23 }
 0x11f   :  { %v210_v25 = vmax.f32 %v207_v24, 0.0 }
 0x121   :  { %250 = vmatmul.f32.gmra.mxu0 %v210_v25 }
 0x196   :  { %v248_v32 = vpop.f32.mrf.mxu0 }
 0x197   :  { %v249_v33 = vadd.f32 %v357_v31, %v248_v32 }
 0x199   :  { %v254_v34 = vmax.f32 %v249_v33, 0.0 }
 0x19b   :  { %349 = vmatmul.msk.f32.vlgmr.msrb.gmra.mxu1 %vm268_vm1, %v254_v34 }
 0x19e   :  { %v251_v35 = vpop.f32.mrf.mxu0 }
 0x19f   :  { %v252_v36 = vadd.f32 %v357_v31, %v251_v35 }
 0x1a1   :  { %v255_v37 = vmax.f32 %v252_v36, 0.0 }
 0x1a3   :  { %350 = vmatmul.msk.f32.gmra.mxu1 %vm268_vm1, %v255_v37 }
 0x218   :  { %v292_v40 = vpop.f32.mrf.mxu1 }
 0x219   :  { %v293_v41 = vadd.f32 %v358_v39, %v292_v40 }
 0x21b   :  { %v298_v42 = vmax.f32 %v293_v41, 0.0 }
 0x21d   :  { %351 = vmatmul.msk.f32.vlgmr.msra.gmra.mxu1 %vm70_vm0, %v298_v42 }
 0x220   :  { %v295_v43 = vpop.f32.mrf.mxu1 }
 0x221   :  { %v296_v44 = vadd.f32 %v358_v39, %v295_v43 }
 0x223   :  { %v299_v45 = vmax.f32 %v296_v44, 0.0 }
 0x225   :  { %352 = vmatmul.msk.f32.gmra.mxu1 %vm70_vm0, %v299_v45 }
 0x29a   :  { %v331_v47 = vpop.f32.mrf.mxu1 }
 0x29b   :  { %v332_v48 = vadd.f32 %v359_v46, %v331_v47 }
 0x29d   :  { %338 = vst.msk [vmem:[%s676_s11] sm:$0xff] %vm337_vm2, %v332_v48 }
 0x2a2   :  { %v334_v49 = vpop.f32.mrf.mxu1 }
 0x2a3   :  { %v335_v50 = vadd.f32 %v359_v46, %v334_v49 }
 0x2a5   :  { %339 = vst.msk [vmem:[%s676_s11 + $0x8] sm:$0xff] %vm337_vm2, %v335_v50 }
 0x2a6   :  { %344 = vsyncpa [#allocation3], 1 }

// kernel: generator_forward.2
= control target key start
LH: loop header
LB: loop body
LE: loop exit
PB: predicated region body
PF: predicated region fallthrough
CT: control target
= control target key end

     0   :  { %10 = vsyncpa [#allocation3], 0  ;;  %s2045_s0 = inlined_call_operand.vmem [shape: f32[8,2,128], index: 0, kind: input, shape index: {}]   ;;  %s2046_s1 = inlined_call_operand.hbm [shape: f32[32,128], index: 1, kind: input, shape index: {}]   ;;  %s2047_s2 = inlined_call_operand.hbm [shape: f32[32,128], index: 2, kind: input, shape index: {}]   ;;  %s2048_s3 = inlined_call_operand.vmem [shape: f32[1,128], index: 3, kind: input, shape index: {}]   ;;  %s2049_s4 = inlined_call_operand.hbm [shape: f32[32,128], index: 4, kind: input, shape index: {}]   ;;  %s2050_s5 = inlined_call_operand.vmem [shape: f32[8,2,32], index: 5, kind: output, shape index: {}]  }
   0x1   :  { %11 = vsyncpa [#allocation5], 0  ;;  %s31_s20 = sshll.u32 %s2047_s2, 4  ;;  %s1682_s21 = smov [#allocation4]   ;;  %s32_s20 = int_to_ptr.hbm [resolvable:$true] %s31_s20 }
   0x2   :  { %s33_s22 = sshll.u32 %s1682_s21, 4  ;;  %s18_s25 = sshll.u32 %s2046_s1, 4  ;;  %s34_s22 = int_to_ptr.vmem [resolvable:$true] %s33_s22  ;;  %s19_s25 = int_to_ptr.hbm [resolvable:$true] %s18_s25 }
   0x3   :  { %s1683_s26 = smov 128   ;;  %s1684_s27 = smov 8  }
   0x4   :  { %39 = dma.hbm_to_vmem [thread:$0]  %s32_s20, 512, %s34_s22, [#allocation5], %s1683_s26, %s1683_s26, %s1684_s27  }
   0x5   :  { %s1685_s28 = smov [#allocation2]   ;;  %s46_s7 = sshll.u32 %s2049_s4, 4  ;;  %s47_s7 = int_to_ptr.hbm [resolvable:$true] %s46_s7 }
   0x6   :  { %s20_s29 = sshll.u32 %s1685_s28, 4  ;;  %s1686_s2 = smov [#allocation6]   ;;  %s21_s29 = int_to_ptr.vmem [resolvable:$true] %s20_s29 }
   0x7   :  { %26 = dma.hbm_to_vmem [thread:$0]  %s19_s25, 512, %s21_s29, [#allocation3], %s1683_s26, %s1683_s26, %s1684_s27  }
   0x8   :  { %s48_s8 = sshll.u32 %s1686_s2, 4  ;;  %s49_s8 = int_to_ptr.vmem [resolvable:$true] %s48_s8 }
   0x9   :  { %54 = dma.hbm_to_vmem [thread:$0]  %s47_s7, 512, %s49_s8, [#allocation5], %s1683_s26, %s1683_s26, %s1684_s27  }
   0xa   :  { %1678 = dma.done.wait [#allocation3], 512  }
   0xb   :  { %1679 = vsyncadd [#allocation3], 4294966784 }
   0xc   :  { %1680 = dma.done.wait [#allocation5], 1024  }
   0xd   :  { %1681 = vsyncadd [#allocation5], 4294966272  ;;  %v1729_v0 = vld [vmem:[#allocation2 + $0x18] sm:$0xff]  ;;  %v1731_v1 = vld [vmem:[#allocation2 + $0x10] sm:$0xff]  ;;  %v1687_v4 = vmov 0.0   ;;  %s1688_s9 = smov 32  }
   0xe   :  { %88 = vmatpush.msra.mxu0 %v1729_v0  ;;  %v1734_v2 = vld [vmem:[#allocation2 + $0x8] sm:$0xff]  ;;  %253 = vmatpush.msra.mxu3 %v1729_v0  ;;  %v1739_v3 = vld [vmem:[#allocation2] sm:$0xff]  ;;  %v1755_v28 = vld [vmem:[#allocation4 + $0x18] sm:$0xff]  ;;  %s1689_s10 = smov 64   ;;  %vm72_vm4 = vcmask 261120   ;;  %vm233_vm13 = vcmask 254976  }
   0xf   :  { %v67_v5 = vld [vmem:[%s2045_s0] sm:$0x3]  ;;  %v1757_v29 = vld [vmem:[#allocation4 + $0x10] sm:$0xff]  ;;  %179 = vmatpush.msra.mxu2 %v1755_v28  ;;  %v1760_v30 = vld [vmem:[#allocation6 + $0x18] sm:$0xff] }
  0x10   :  { %89 = vmatpush.msra.mxu0 %v1731_v1  ;;  %254 = vmatpush.msra.mxu3 %v1731_v1  ;;  %v1762_v31 = vld [vmem:[#allocation4 + $0x8] sm:$0xff]  ;;  %v1768_v32 = vld [vmem:[#allocation4] sm:$0xff]  ;;  %v1777_v35 = vld [vmem:[#allocation6 + $0x10] sm:$0xff] }
  0x11   :  { %154 = vmatpush.msra.mxu1 %v1760_v30  ;;  %180 = vmatpush.msra.mxu2 %v1757_v29  ;;  %v1779_v36 = vld [vmem:[#allocation6 + $0x8] sm:$0xff]  ;;  %v1783_v37 = vld [vmem:[#allocation6] sm:$0xff] }
  0x12   :  { %90 = vmatpush.msra.mxu0 %v1734_v2  ;;  %255 = vmatpush.msra.mxu3 %v1734_v2  ;;  %v1470_v40 = vld [vmem:[%s2048_s3] ss:$0 sm:$0xff]  ;;  %v1413_v44 = vld [vmem:[%s2045_s0 + $0x2] sm:$0x3] }
  0x13   :  { %181 = vmatpush.msra.mxu2 %v1762_v31  ;;  %155 = vmatpush.msra.mxu1 %v1777_v35 }
  0x14   :  { %91 = vmatpush.msra.mxu0 %v1739_v3  ;;  %256 = vmatpush.msra.mxu3 %v1739_v3 }
  0x15   :  { %92 = vmatmul.f32.vlgmr.msra.gmra.mxu0 %v1687_v4  ;;  %182 = vmatpush.msra.mxu2 %v1768_v32 }
  0x16   :  { %321 = vmatpush.msrb.mxu0 %v1760_v30  ;;  %488 = vmatpush.msrb.mxu3 %v1760_v30 }
  0x17   :  { %420 = vmatpush.msrb.mxu2 %v1729_v0  ;;  %156 = vmatpush.msra.mxu1 %v1779_v36 }
  0x18   :  { %322 = vmatpush.msrb.mxu0 %v1777_v35  ;;  %489 = vmatpush.msrb.mxu3 %v1777_v35 }
  0x19   :  { %421 = vmatpush.msrb.mxu2 %v1731_v1  ;;  %157 = vmatpush.msra.mxu1 %v1783_v37 }
  0x1a   :  { %323 = vmatpush.msrb.mxu0 %v1779_v36  ;;  %490 = vmatpush.msrb.mxu3 %v1779_v36 }
  0x1b   :  { %422 = vmatpush.msrb.mxu2 %v1734_v2  ;;  %158 = vmatmul.f32.vlgmr.msra.gmra.mxu1 %v1687_v4 }
  0x1c   :  { %324 = vmatpush.msrb.mxu0 %v1783_v37  ;;  %346 = vmatpush.msrb.mxu1 %v1755_v28 }
  0x1d   :  { %423 = vmatpush.msrb.mxu2 %v1739_v3  ;;  %491 = vmatpush.msrb.mxu3 %v1783_v37 }
  0x1e   :  { %513 = vmatpush.msra.mxu0 %v1755_v28  ;;  %347 = vmatpush.msrb.mxu1 %v1757_v29 }
  0x20   :  { %514 = vmatpush.msra.mxu0 %v1757_v29  ;;  %348 = vmatpush.msrb.mxu1 %v1762_v31 }
  0x22   :  { %515 = vmatpush.msra.mxu0 %v1762_v31  ;;  %349 = vmatpush.msrb.mxu1 %v1768_v32 }
  0x24   :  { %516 = vmatpush.msra.mxu0 %v1768_v32  ;;  %587 = vmatpush.msra.mxu1 %v1729_v0 }
  0x26   :  { %588 = vmatpush.msra.mxu1 %v1731_v1 }
  0x28   :  { %589 = vmatpush.msra.mxu1 %v1734_v2 }
  0x2a   :  { %590 = vmatpush.msra.mxu1 %v1739_v3 }
  0x92   :  { %v93_v6 = vpop.f32.mrf.mxu0 }
  0x93   :  { %v96_v7 = vadd.f32 %v93_v6, %v67_v5 }
  0x95   :  { %1478 = vtanh.f32 %v96_v7  ;;  %v1410_v9 = vmul.f32 -1.442695, %v96_v7 }
  0x97   :  { %1480 = vpow2.f32 %v1410_v9 }
  0x98   :  { %v159_v39 = vpop.f32.mrf.mxu1 }
  0x9b   :  { %v1479_v8 = vpop.eup %1478 }
  0x9c   :  { %119 = vrot.lane.b32.xlu0 %v1479_v8, %s1688_s9 }
  0x9d   :  { %v1481_v10 = vpop.eup %1480 }
  0x9e   :  { %v100_v11 = vadd.f32 1.0, %v1481_v10 }
  0xa0   :  { %1482 = vrcp.f32 %v100_v11  ;;  %v112_v17 = vand.u32 2147483648, %v100_v11  ;;  %vm106_vm1 = vweird.f32 %v100_v11  ;;  %v110_v18 = vand.u32 2147483647, %v100_v11 }
  0xa2   :  { %v113_v20 = vor.u32 1.1754944e-38, %v112_v17  ;;  %vm111_vm3 = vcmp.eq.f32.partialorder %v110_v18, 8.507059e+37 }
  0xa6   :  { %v1483_v12 = vpop.eup %1482 }
  0xa7   :  { %v102_v13 = vmul.f32 %v1483_v12, %v100_v11  ;;  %vm107_vm0 = vweird.f32 %v1483_v12 }
  0xa8   :  { %vm108_vm2 = vmor %vm106_vm1, %vm107_vm0 }
  0xa9   :  { %v103_v14 = vsub.f32 1.0, %v102_v13 }
  0xab   :  { %v104_v15 = vmul.f32 %v1483_v12, %v103_v14 }
  0xad   :  { %v105_v16 = vadd.f32 %v1483_v12, %v104_v15 }
  0xaf   :  { %v109_v19 = vsel %vm108_vm2, %v1483_v12, %v105_v16 }
  0xb0   :  { %v114_v22 = vsel %vm111_vm3, %v113_v20, %v109_v19 }
  0xb1   :  { %v117_v24 = vmul.f32 0.0, %v114_v22 }
 0x10e   :  { %v120_v21 = vpop.permute.xlu0 %119 }
 0x10f   :  { %v122_v23 = vmul.f32 %v120_v21, %v114_v22 }
 0x111   :  { %124 = vrot.lane.b32.xlu0 %v122_v23, %s1688_s9 }
 0x183   :  { %v125_v25 = vpop.permute.xlu0 %124 }
 0x184   :  { %v1751_v26 = vadd.f32 %v125_v25, %v117_v24 }
 0x186   :  { %1484 = vtanh.f32 %v1751_v26 }
 0x18c   :  { %v1485_v27 = vpop.eup %1484 }
 0x18d   :  { %130 = vrot.lane.b32.xlu1 %v1485_v27, %s1688_s9 }
 0x1ff   :  { %v131_v33 = vpop.permute.xlu1 %130 }
 0x200   :  { %v133_v34 = vmul.f32 %v131_v33, %v114_v22 }
 0x202   :  { %163 = vrot.lane.b32.xlu1 %v133_v34, %s1689_s10 }
 0x274   :  { %v164_v38 = vpop.permute.xlu1 %163 }
 0x275   :  { %1411 = vmatmul.msk.f32.vlgmr.msra.gmra.mxu2 %vm72_vm4, %v164_v38  ;;  %1414 = vmatmul.msk.f32.vlgmr.msra.gmra.mxu3 %vm72_vm4, %v164_v38 }
 0x276   :  { %655 = vmatpush.msra.mxu2 %v1760_v30  ;;  %680 = vmatpush.msra.mxu3 %v1755_v28 }
 0x278   :  { %656 = vmatpush.msra.mxu2 %v1777_v35  ;;  %681 = vmatpush.msra.mxu3 %v1757_v29 }
 0x27a   :  { %657 = vmatpush.msra.mxu2 %v1779_v36  ;;  %682 = vmatpush.msra.mxu3 %v1762_v31 }
 0x27c   :  { %658 = vmatpush.msra.mxu2 %v1783_v37  ;;  %683 = vmatpush.msra.mxu3 %v1768_v32 }
 0x2f8   :  { %v184_v41 = vpop.f32.mrf.mxu2  ;;  %v258_v45 = vpop.f32.mrf.mxu3 }
 0x2f9   :  { %v185_v42 = vadd.f32 %v184_v41, %v159_v39  ;;  %v261_v46 = vadd.f32 %v1413_v44, %v258_v45  ;;  %v1471_v41 = vld [vmem:[%s2048_s3] ss:$0 sm:$0xff] }
 0x2fb   :  { %v191_v43 = vadd.f32 %v1470_v40, %v185_v42  ;;  %v1415_v50 = vmul.f32 -1.442695, %v261_v46 }
 0x2fd   :  { %1486 = vtanh.f32 %v191_v43  ;;  %v1412_v49 = vmul.f32 -1.442695, %v191_v43 }
 0x2fe   :  { %1488 = vtanh.f32 %v261_v46  ;;  %v1420_v46 = vld [vmem:[%s2045_s0 + $0x4] sm:$0x3] }
 0x2ff   :  { %1490 = vpow2.f32 %v1412_v49 }
 0x300   :  { %1492 = vpow2.f32 %v1415_v50 }
 0x303   :  { %v1487_v47 = vpop.eup %1486 }
 0x304   :  { %214 = vrot.lane.b32.xlu2 %v1487_v47, %s1688_s9  ;;  %v1489_v48 = vpop.eup %1488 }
 0x305   :  { %v1491_v51 = vpop.eup %1490 }
 0x306   :  { %v195_v52 = vadd.f32 1.0, %v1491_v51  ;;  %v1493_v53 = vpop.eup %1492 }
 0x307   :  { %v265_v54 = vadd.f32 1.0, %v1493_v53 }
 0x308   :  { %1494 = vrcp.f32 %v195_v52  ;;  %v207_v63 = vand.u32 2147483648, %v195_v52  ;;  %vm201_vm6 = vweird.f32 %v195_v52  ;;  %v205_v4 = vand.u32 2147483647, %v195_v52 }
 0x309   :  { %1496 = vrcp.f32 %v265_v54  ;;  %v277_v12 = vand.u32 2147483648, %v265_v54  ;;  %vm271_vm10 = vweird.f32 %v265_v54  ;;  %v275_v13 = vand.u32 2147483647, %v265_v54 }
 0x30a   :  { %v208_v7 = vor.u32 1.1754944e-38, %v207_v63  ;;  %vm206_vm8 = vcmp.eq.f32.partialorder %v205_v4, 8.507059e+37 }
 0x30b   :  { %v278_v15 = vor.u32 1.1754944e-38, %v277_v12  ;;  %vm276_vm12 = vcmp.eq.f32.partialorder %v275_v13, 8.507059e+37 }
 0x30c   :  { %284 = vrot.lane.b32.xlu2 %v1489_v48, %s1688_s9 }
 0x30e   :  { %v1495_v55 = vpop.eup %1494 }
 0x30f   :  { %v197_v56 = vmul.f32 %v1495_v55, %v195_v52  ;;  %v1497_v58 = vpop.eup %1496  ;;  %vm202_vm5 = vweird.f32 %v1495_v55 }
 0x310   :  { %v267_v60 = vmul.f32 %v1497_v58, %v265_v54  ;;  %vm203_vm7 = vmor %vm201_vm6, %vm202_vm5  ;;  %vm272_vm9 = vweird.f32 %v1497_v58 }
 0x311   :  { %v198_v57 = vsub.f32 1.0, %v197_v56  ;;  %vm273_vm11 = vmor %vm271_vm10, %vm272_vm9 }
 0x312   :  { %v268_v62 = vsub.f32 1.0, %v267_v60 }
 0x313   :  { %v199_v59 = vmul.f32 %v1495_v55, %v198_v57 }
 0x314   :  { %v269_v6 = vmul.f32 %v1497_v58, %v268_v62 }
 0x315   :  { %v200_v61 = vadd.f32 %v1495_v55, %v199_v59 }
 0x316   :  { %v270_v11 = vadd.f32 %v1497_v58, %v269_v6 }
 0x317   :  { %v204_v5 = vsel %vm203_vm7, %v1495_v55, %v200_v61 }
 0x318   :  { %v209_v9 = vsel %vm206_vm8, %v208_v7, %v204_v5  ;;  %v274_v14 = vsel %vm273_vm11, %v1497_v58, %v270_v11 }
 0x319   :  { %v279_v16 = vsel %vm276_vm12, %v278_v15, %v274_v14  ;;  %v212_v19 = vmul.f32 0.0, %v209_v9 }
 0x31a   :  { %v282_v22 = vmul.f32 %v279_v16, %v1751_v26 }
 0x35e   :  { %v215_v8 = vpop.permute.xlu2 %214 }
 0x35f   :  { %v217_v10 = vmul.f32 %v215_v8, %v209_v9 }
 0x361   :  { %219 = vrot.lane.b32.xlu0 %v217_v10, %s1688_s9 }
 0x366   :  { %v285_v17 = vpop.permute.xlu2 %284 }
 0x367   :  { %v287_v18 = vmul.f32 %v285_v17, %v279_v16 }
 0x369   :  { %289 = vrot.lane.b32.xlu1 %v287_v18, %s1688_s9 }
 0x3d3   :  { %v220_v20 = vpop.permute.xlu0 %219 }
 0x3d4   :  { %v1825_v21 = vadd.f32 %v220_v20, %v212_v19 }
 0x3d6   :  { %1498 = vtanh.f32 %v1825_v21 }
 0x3db   :  { %v290_v23 = vpop.permute.xlu1 %289 }
 0x3dc   :  { %v1499_v24 = vpop.eup %1498  ;;  %v1829_v25 = vadd.f32 %v290_v23, %v282_v22 }
 0x3dd   :  { %225 = vrot.lane.b32.xlu2 %v1499_v24, %s1688_s9 }
 0x3de   :  { %1500 = vtanh.f32 %v1829_v25 }
 0x3e4   :  { %v1501_v27 = vpop.eup %1500 }
 0x3e5   :  { %295 = vrot.lane.b32.xlu0 %v1501_v27, %s1688_s9 }
 0x437   :  { %v226_v33 = vpop.permute.xlu2 %225 }
 0x438   :  { %v228_v34 = vmul.f32 %v226_v33, %v209_v9 }
 0x43a   :  { %230 = vrot.lane.b32.xlu1 %v228_v34, %s1689_s10 }
 0x457   :  { %v296_v38 = vpop.permute.xlu0 %295 }
 0x458   :  { %v298_v39 = vmul.f32 %v296_v38, %v279_v16 }
 0x45a   :  { %330 = vrot.lane.b32.xlu2 %v298_v39, %s1689_s10 }
 0x4ac   :  { %v231_v26 = vpop.permute.xlu1 %230 }
 0x4ad   :  { %234 = vst.msk [vmem:[%s2050_s5] sm:$0x3] %vm233_vm13, %v231_v26  ;;  %1416 = vmatmul.msk.f32.vlgmr.msrb.gmra.mxu0 %vm72_vm4, %v231_v26 }
 0x4ae   :  { %754 = vmatpush.msrb.mxu0 %v1729_v0 }
 0x4b0   :  { %755 = vmatpush.msrb.mxu0 %v1731_v1 }
 0x4b2   :  { %756 = vmatpush.msrb.mxu0 %v1734_v2 }
 0x4b4   :  { %v331_v40 = vpop.permute.xlu2 %330  ;;  %757 = vmatpush.msrb.mxu0 %v1739_v3 }
 0x4b5   :  { %1417 = vmatmul.msk.f32.vlgmr.msrb.gmra.mxu1 %vm72_vm4, %v331_v40  ;;  %1421 = vmatmul.msk.f32.vlgmr.msrb.gmra.mxu2 %vm72_vm4, %v331_v40 }
 0x4b6   :  { %822 = vmatpush.msrb.mxu1 %v1760_v30  ;;  %847 = vmatpush.msrb.mxu2 %v1755_v28 }
 0x4b8   :  { %823 = vmatpush.msrb.mxu1 %v1777_v35  ;;  %848 = vmatpush.msrb.mxu2 %v1757_v29 }
 0x4ba   :  { %824 = vmatpush.msrb.mxu1 %v1779_v36  ;;  %849 = vmatpush.msrb.mxu2 %v1762_v31 }
 0x4bc   :  { %825 = vmatpush.msrb.mxu1 %v1783_v37  ;;  %850 = vmatpush.msrb.mxu2 %v1768_v32 }
 0x52a   :  { %v326_v42 = vpop.f32.mrf.mxu0 }
 0x532   :  { %v351_v43 = vpop.f32.mrf.mxu1 }
 0x533   :  { %v352_v44 = vadd.f32 %v351_v43, %v326_v42 }
 0x535   :  { %v358_v45 = vadd.f32 %v1471_v41, %v352_v44 }
 0x537   :  { %1502 = vtanh.f32 %v358_v45  ;;  %v1418_v51 = vmul.f32 -1.442695, %v358_v45 }
 0x538   :  { %v425_v47 = vpop.f32.mrf.mxu2 }
 0x539   :  { %v428_v48 = vadd.f32 %v1420_v46, %v425_v47 }
 0x53b   :  { %1504 = vtanh.f32 %v428_v48  ;;  %v1422_v52 = vmul.f32 -1.442695, %v428_v48 }
 0x53c   :  { %1506 = vpow2.f32 %v1418_v51 }
 0x53d   :  { %v1503_v49 = vpop.eup %1502  ;;  %1508 = vpow2.f32 %v1422_v52 }
 0x53e   :  { %381 = vrot.lane.b32.xlu0 %v1503_v49, %s1688_s9 }
 0x541   :  { %v1505_v50 = vpop.eup %1504 }
 0x542   :  { %451 = vrot.lane.b32.xlu1 %v1505_v50, %s1688_s9  ;;  %v1507_v53 = vpop.eup %1506 }
 0x543   :  { %v362_v54 = vadd.f32 1.0, %v1507_v53  ;;  %v1509_v55 = vpop.eup %1508 }
 0x544   :  { %v432_v56 = vadd.f32 1.0, %v1509_v55 }
 0x545   :  { %1510 = vrcp.f32 %v362_v54  ;;  %v374_v6 = vand.u32 2147483648, %v362_v54  ;;  %vm368_vm15 = vweird.f32 %v362_v54  ;;  %v372_v7 = vand.u32 2147483647, %v362_v54 }
 0x546   :  { %1512 = vrcp.f32 %v432_v56  ;;  %v444_v11 = vand.u32 2147483648, %v432_v56  ;;  %vm438_vm3 = vweird.f32 %v432_v56  ;;  %v442_v12 = vand.u32 2147483647, %v432_v56 }
 0x547   :  { %v375_v10 = vor.u32 1.1754944e-38, %v374_v6  ;;  %vm373_vm2 = vcmp.eq.f32.partialorder %v372_v7, 8.507059e+37 }
 0x548   :  { %v445_v17 = vor.u32 1.1754944e-38, %v444_v11  ;;  %vm443_vm6 = vcmp.eq.f32.partialorder %v442_v12, 8.507059e+37 }
 0x54b   :  { %v1511_v57 = vpop.eup %1510 }
 0x54c   :  { %v364_v58 = vmul.f32 %v1511_v57, %v362_v54  ;;  %v1513_v59 = vpop.eup %1512  ;;  %vm369_vm14 = vweird.f32 %v1511_v57 }
 0x54d   :  { %v434_v61 = vmul.f32 %v1513_v59, %v432_v56  ;;  %vm370_vm0 = vmor %vm368_vm15, %vm369_vm14  ;;  %vm439_vm1 = vweird.f32 %v1513_v59 }
 0x54e   :  { %v365_v60 = vsub.f32 1.0, %v364_v58  ;;  %vm440_vm5 = vmor %vm438_vm3, %vm439_vm1 }
 0x54f   :  { %v435_v63 = vsub.f32 1.0, %v434_v61 }
 0x550   :  { %v366_v62 = vmul.f32 %v1511_v57, %v365_v60 }
 0x551   :  { %v436_v5 = vmul.f32 %v1513_v59, %v435_v63 }
 0x552   :  { %v367_v4 = vadd.f32 %v1511_v57, %v366_v62 }
 0x553   :  { %v437_v9 = vadd.f32 %v1513_v59, %v436_v5 }
 0x554   :  { %v371_v8 = vsel %vm370_vm0, %v1511_v57, %v367_v4 }
 0x555   :  { %v376_v14 = vsel %vm373_vm2, %v375_v10, %v371_v8  ;;  %v441_v16 = vsel %vm440_vm5, %v1513_v59, %v437_v9 }
 0x556   :  { %v446_v19 = vsel %vm443_vm6, %v445_v17, %v441_v16  ;;  %v379_v22 = vmul.f32 %v376_v14, %v1825_v21 }
 0x557   :  { %v449_v33 = vmul.f32 %v446_v19, %v1829_v25 }
 0x5b0   :  { %v382_v13 = vpop.permute.xlu0 %381 }
 0x5b1   :  { %v384_v15 = vmul.f32 %v382_v13, %v376_v14 }
 0x5b3   :  { %386 = vrot.lane.b32.xlu2 %v384_v15, %s1688_s9 }
 0x5b4   :  { %v452_v18 = vpop.permute.xlu1 %451 }
 0x5b5   :  { %v454_v20 = vmul.f32 %v452_v18, %v446_v19 }
 0x5b7   :  { %456 = vrot.lane.b32.xlu0 %v454_v20, %s1688_s9 }
 0x60d   :  { %v387_v23 = vpop.permute.xlu2 %386 }
 0x60e   :  { %v1866_v24 = vadd.f32 %v387_v23, %v379_v22 }
 0x610   :  { %1514 = vtanh.f32 %v1866_v24 }
 0x616   :  { %v1515_v27 = vpop.eup %1514 }
 0x617   :  { %392 = vrot.lane.b32.xlu1 %v1515_v27, %s1688_s9 }
 0x629   :  { %v457_v34 = vpop.permute.xlu0 %456 }
 0x62a   :  { %v1871_v38 = vadd.f32 %v457_v34, %v449_v33  ;;  %v1434_v33 = vld [vmem:[%s2045_s0 + $0x8] sm:$0x3] }
 0x62c   :  { %1516 = vtanh.f32 %v1871_v38 }
 0x632   :  { %v1517_v39 = vpop.eup %1516 }
 0x633   :  { %462 = vrot.lane.b32.xlu2 %v1517_v39, %s1688_s9  ;;  %v1473_v39 = vld [vmem:[%s2048_s3] ss:$0 sm:$0xff] }
 0x689   :  { %v393_v26 = vpop.permute.xlu1 %392 }
 0x68a   :  { %v395_v21 = vmul.f32 %v393_v26, %v376_v14 }
 0x68c   :  { %397 = vrot.lane.b32.xlu0 %v395_v21, %s1689_s10 }
 0x68d   :  { %v463_v40 = vpop.permute.xlu2 %462 }
 0x68e   :  { %v465_v41 = vmul.f32 %v463_v40, %v446_v19 }
 0x690   :  { %497 = vrot.lane.b32.xlu1 %v465_v41, %s1689_s10 }
 0x6fe   :  { %v398_v42 = vpop.permute.xlu0 %397 }
 0x6ff   :  { %1419 = vst.msk [vmem:[%s2050_s5 + $0x2] sm:$0x3] %vm233_vm13, %v398_v42  ;;  %1423 = vmatmul.msk.f32.vlgmr.msrb.gmra.mxu3 %vm72_vm4, %v398_v42 }
 0x700   :  { %921 = vmatpush.msrb.mxu3 %v1729_v0  ;;  %v1427_v0 = vld [vmem:[%s2045_s0 + $0x6] sm:$0x3] }
 0x702   :  { %v498_v25 = vpop.permute.xlu1 %497  ;;  %922 = vmatpush.msrb.mxu3 %v1731_v1 }
 0x703   :  { %1424 = vmatmul.msk.f32.vlgmr.msra.gmra.mxu0 %vm72_vm4, %v498_v25  ;;  %1428 = vmatmul.msk.f32.vlgmr.msra.gmra.mxu1 %vm72_vm4, %v498_v25 }
 0x704   :  { %923 = vmatpush.msrb.mxu3 %v1734_v2  ;;  %1014 = vmatpush.msra.mxu1 %v1755_v28 }
 0x705   :  { %989 = vmatpush.msra.mxu0 %v1760_v30 }
 0x706   :  { %924 = vmatpush.msrb.mxu3 %v1739_v3  ;;  %1015 = vmatpush.msra.mxu1 %v1757_v29  ;;  %v1472_v3 = vld [vmem:[%s2048_s3] ss:$0 sm:$0xff] }
 0x707   :  { %990 = vmatpush.msra.mxu0 %v1777_v35 }
 0x708   :  { %1016 = vmatpush.msra.mxu1 %v1762_v31 }
 0x709   :  { %991 = vmatpush.msra.mxu0 %v1779_v36 }
 0x70a   :  { %1017 = vmatpush.msra.mxu1 %v1768_v32 }
 0x70b   :  { %992 = vmatpush.msra.mxu0 %v1783_v37 }
 0x780   :  { %v592_v1 = vpop.f32.mrf.mxu1  ;;  %v518_v28 = vpop.f32.mrf.mxu0 }
 0x781   :  { %v595_v2 = vadd.f32 %v1427_v0, %v592_v1 }
 0x782   :  { %v493_v29 = vpop.f32.mrf.mxu3 }
 0x783   :  { %1518 = vtanh.f32 %v595_v2  ;;  %v519_v30 = vadd.f32 %v518_v28, %v493_v29  ;;  %v1429_v44 = vmul.f32 -1.442695, %v595_v2 }
 0x785   :  { %v525_v31 = vadd.f32 %v1472_v3, %v519_v30 }
 0x787   :  { %1520 = vtanh.f32 %v525_v31  ;;  %v1425_v36 = vmul.f32 -1.442695, %v525_v31 }
 0x789   :  { %v1519_v35 = vpop.eup %1518  ;;  %1522 = vpow2.f32 %v1425_v36 }
 0x78a   :  { %618 = vrot.lane.b32.xlu0 %v1519_v35, %s1688_s9 }
 0x78d   :  { %v1521_v32 = vpop.eup %1520 }
 0x78e   :  { %548 = vrot.lane.b32.xlu2 %v1521_v32, %s1688_s9 }
 0x78f   :  { %v1523_v37 = vpop.eup %1522 }
 0x790   :  { %v529_v43 = vadd.f32 1.0, %v1523_v37 }
 0x792   :  { %1524 = vrcp.f32 %v529_v43  ;;  %v541_v52 = vand.u32 2147483648, %v529_v43  ;;  %vm535_vm8 = vweird.f32 %v529_v43  ;;  %v539_v53 = vand.u32 2147483647, %v529_v43 }
 0x793   :  { %1526 = vpow2.f32 %v1429_v44 }
 0x794   :  { %v542_v56 = vor.u32 1.1754944e-38, %v541_v52  ;;  %vm540_vm10 = vcmp.eq.f32.partialorder %v539_v53, 8.507059e+37 }
 0x798   :  { %v1525_v45 = vpop.eup %1524 }
 0x799   :  { %v531_v46 = vmul.f32 %v1525_v45, %v529_v43  ;;  %v1527_v47 = vpop.eup %1526  ;;  %vm536_vm7 = vweird.f32 %v1525_v45 }
 0x79a   :  { %v599_v49 = vadd.f32 1.0, %v1527_v47  ;;  %vm537_vm9 = vmor %vm535_vm8, %vm536_vm7 }
 0x79b   :  { %v532_v48 = vsub.f32 1.0, %v531_v46 }
 0x79c   :  { %1528 = vrcp.f32 %v599_v49  ;;  %v611_v4 = vand.u32 2147483648, %v599_v49  ;;  %vm605_vm12 = vweird.f32 %v599_v49  ;;  %v609_v5 = vand.u32 2147483647, %v599_v49 }
 0x79d   :  { %v533_v50 = vmul.f32 %v1525_v45, %v532_v48 }
 0x79e   :  { %v612_v7 = vor.u32 1.1754944e-38, %v611_v4  ;;  %vm610_vm15 = vcmp.eq.f32.partialorder %v609_v5, 8.507059e+37 }
 0x79f   :  { %v534_v51 = vadd.f32 %v1525_v45, %v533_v50 }
 0x7a1   :  { %v538_v54 = vsel %vm537_vm9, %v1525_v45, %v534_v51 }
 0x7a2   :  { %v1529_v55 = vpop.eup %1528  ;;  %v543_v58 = vsel %vm540_vm10, %v542_v56, %v538_v54 }
 0x7a3   :  { %v601_v60 = vmul.f32 %v1529_v55, %v599_v49  ;;  %vm606_vm11 = vweird.f32 %v1529_v55  ;;  %v546_v14 = vmul.f32 %v543_v58, %v1866_v24 }
 0x7a4   :  { %vm607_vm14 = vmor %vm605_vm12, %vm606_vm11 }
 0x7a5   :  { %v602_v61 = vsub.f32 1.0, %v601_v60 }
 0x7a7   :  { %v603_v62 = vmul.f32 %v1529_v55, %v602_v61 }
 0x7a9   :  { %v604_v63 = vadd.f32 %v1529_v55, %v603_v62 }
 0x7ab   :  { %v608_v6 = vsel %vm607_vm14, %v1529_v55, %v604_v63 }
 0x7ac   :  { %v613_v9 = vsel %vm610_vm15, %v612_v7, %v608_v6 }
 0x7ad   :  { %v616_v11 = vmul.f32 %v613_v9, %v1871_v38 }
 0x7e8   :  { %v549_v57 = vpop.permute.xlu2 %548 }
 0x7e9   :  { %v551_v59 = vmul.f32 %v549_v57, %v543_v58 }
 0x7eb   :  { %553 = vrot.lane.b32.xlu1 %v551_v59, %s1688_s9 }
 0x7fc   :  { %v619_v8 = vpop.permute.xlu0 %618 }
 0x7fd   :  { %v621_v10 = vmul.f32 %v619_v8, %v613_v9 }
 0x7ff   :  { %623 = vrot.lane.b32.xlu2 %v621_v10, %s1688_s9 }
 0x859   :  { %v624_v12 = vpop.permute.xlu2 %623 }
 0x85a   :  { %v1907_v13 = vadd.f32 %v624_v12, %v616_v11 }
 0x85c   :  { %1530 = vtanh.f32 %v1907_v13 }
 0x85d   :  { %v554_v15 = vpop.permute.xlu1 %553 }
 0x85e   :  { %v1911_v16 = vadd.f32 %v554_v15, %v546_v14  ;;  %v1441_v15 = vld [vmem:[%s2045_s0 + $0xa] sm:$0x3] }
 0x860   :  { %1532 = vtanh.f32 %v1911_v16 }
 0x862   :  { %v1531_v17 = vpop.eup %1530 }
 0x863   :  { %629 = vrot.lane.b32.xlu1 %v1531_v17, %s1688_s9  ;;  %v1474_v17 = vld [vmem:[%s2048_s3] ss:$0 sm:$0xff] }
 0x866   :  { %v1533_v18 = vpop.eup %1532 }
 0x867   :  { %559 = vrot.lane.b32.xlu0 %v1533_v18, %s1688_s9 }
 0x8d5   :  { %v630_v19 = vpop.permute.xlu1 %629 }
 0x8d6   :  { %v632_v20 = vmul.f32 %v630_v19, %v613_v9 }
 0x8d8   :  { %664 = vrot.lane.b32.xlu0 %v632_v20, %s1689_s10 }
 0x8d9   :  { %v560_v22 = vpop.permute.xlu0 %559 }
 0x8da   :  { %v562_v23 = vmul.f32 %v560_v22, %v543_v58 }
 0x8dc   :  { %564 = vrot.lane.b32.xlu2 %v562_v23, %s1689_s10 }
 0x936   :  { %v565_v24 = vpop.permute.xlu2 %564 }
 0x937   :  { %1426 = vst.msk [vmem:[%s2050_s5 + $0x4] sm:$0x3] %vm233_vm13, %v565_v24  ;;  %1430 = vmatmul.msk.f32.vlgmr.msra.gmra.mxu2 %vm72_vm4, %v565_v24 }
 0x94a   :  { %v665_v27 = vpop.permute.xlu0 %664 }
 0x94b   :  { %1431 = vmatmul.msk.f32.vlgmr.msra.gmra.mxu3 %vm72_vm4, %v665_v27  ;;  %1435 = vmatmul.msk.f32.vlgmr.msrb.gmra.mxu0 %vm72_vm4, %v665_v27 }
 0x9ba   :  { %v660_v26 = vpop.f32.mrf.mxu2 }
 0x9c8   :  { %v759_v34 = vpop.f32.mrf.mxu0 }
 0x9c9   :  { %v762_v38 = vadd.f32 %v1434_v33, %v759_v34 }
 0x9cb   :  { %1534 = vtanh.f32 %v762_v38  ;;  %v1436_v3 = vmul.f32 -1.442695, %v762_v38 }
 0x9ce   :  { %v685_v21 = vpop.f32.mrf.mxu3 }
 0x9cf   :  { %v686_v40 = vadd.f32 %v685_v21, %v660_v26 }
 0x9d1   :  { %v1535_v41 = vpop.eup %1534  ;;  %v692_v42 = vadd.f32 %v1473_v39, %v686_v40 }
 0x9d2   :  { %785 = vrot.lane.b32.xlu1 %v1535_v41, %s1688_s9 }
 0x9d3   :  { %1536 = vtanh.f32 %v692_v42  ;;  %v1432_v0 = vmul.f32 -1.442695, %v692_v42 }
 0x9d5   :  { %1538 = vpow2.f32 %v1432_v0 }
 0x9d9   :  { %v1537_v25 = vpop.eup %1536 }
 0x9da   :  { %715 = vrot.lane.b32.xlu2 %v1537_v25, %s1688_s9 }
 0x9db   :  { %v1539_v1 = vpop.eup %1538 }
 0x9dc   :  { %v696_v2 = vadd.f32 1.0, %v1539_v1 }
 0x9de   :  { %1540 = vrcp.f32 %v696_v2  ;;  %v708_v43 = vand.u32 2147483648, %v696_v2  ;;  %vm702_vm1 = vweird.f32 %v696_v2  ;;  %v706_v44 = vand.u32 2147483647, %v696_v2 }
 0x9df   :  { %1542 = vpow2.f32 %v1436_v3 }
 0x9e0   :  { %v709_v47 = vor.u32 1.1754944e-38, %v708_v43  ;;  %vm707_vm3 = vcmp.eq.f32.partialorder %v706_v44, 8.507059e+37 }
 0x9e4   :  { %v1541_v28 = vpop.eup %1540 }
 0x9e5   :  { %v1543_v29 = vpop.eup %1542  ;;  %v698_v30 = vmul.f32 %v1541_v28, %v696_v2  ;;  %vm703_vm0 = vweird.f32 %v1541_v28 }
 0x9e6   :  { %v766_v31 = vadd.f32 1.0, %v1543_v29  ;;  %vm704_vm2 = vmor %vm702_vm1, %vm703_vm0 }
 0x9e7   :  { %v699_v35 = vsub.f32 1.0, %v698_v30 }
 0x9e8   :  { %1544 = vrcp.f32 %v766_v31  ;;  %v778_v54 = vand.u32 2147483648, %v766_v31  ;;  %vm772_vm6 = vweird.f32 %v766_v31  ;;  %v776_v55 = vand.u32 2147483647, %v766_v31 }
 0x9e9   :  { %v700_v32 = vmul.f32 %v1541_v28, %v699_v35 }
 0x9ea   :  { %v779_v57 = vor.u32 1.1754944e-38, %v778_v54  ;;  %vm777_vm8 = vcmp.eq.f32.partialorder %v776_v55, 8.507059e+37 }
 0x9eb   :  { %v701_v36 = vadd.f32 %v1541_v28, %v700_v32 }
 0x9ed   :  { %v705_v45 = vsel %vm704_vm2, %v1541_v28, %v701_v36 }
 0x9ee   :  { %v1545_v37 = vpop.eup %1544  ;;  %v710_v49 = vsel %vm707_vm3, %v709_v47, %v705_v45 }
 0x9ef   :  { %v768_v46 = vmul.f32 %v1545_v37, %v766_v31  ;;  %vm773_vm5 = vweird.f32 %v1545_v37  ;;  %v713_v61 = vmul.f32 %v710_v49, %v1911_v16 }
 0x9f0   :  { %vm774_vm7 = vmor %vm772_vm6, %vm773_vm5 }
 0x9f1   :  { %v769_v51 = vsub.f32 1.0, %v768_v46 }
 0x9f3   :  { %v770_v52 = vmul.f32 %v1545_v37, %v769_v51 }
 0x9f5   :  { %v771_v53 = vadd.f32 %v1545_v37, %v770_v52 }
 0x9f7   :  { %v775_v56 = vsel %vm774_vm7, %v1545_v37, %v771_v53 }
 0x9f8   :  { %v780_v59 = vsel %vm777_vm8, %v779_v57, %v775_v56 }
 0x9f9   :  { %v783_v5 = vmul.f32 %v780_v59, %v1907_v13 }
 0xa34   :  { %v716_v48 = vpop.permute.xlu2 %715 }
 0xa35   :  { %v718_v50 = vmul.f32 %v716_v48, %v710_v49 }
 0xa37   :  { %720 = vrot.lane.b32.xlu1 %v718_v50, %s1688_s9 }
 0xa44   :  { %v786_v58 = vpop.permute.xlu1 %785 }
 0xa45   :  { %v788_v60 = vmul.f32 %v786_v58, %v780_v59 }
 0xa47   :  { %790 = vrot.lane.b32.xlu0 %v788_v60, %s1688_s9  ;;  %v1074_v60 = vld [vmem:[#allocation2 + $0x10] sm:$0xff] }
 0xaa9   :  { %v721_v62 = vpop.permute.xlu1 %720 }
 0xaaa   :  { %v1936_v63 = vadd.f32 %v721_v62, %v713_v61  ;;  %v1073_v61 = vld [vmem:[#allocation2 + $0x8] sm:$0xff]  ;;  %v1072_v62 = vld [vmem:[#allocation2] sm:$0xff] }
 0xaac   :  { %1546 = vtanh.f32 %v1936_v63 }
 0xab2   :  { %v1547_v4 = vpop.eup %1546 }
 0xab3   :  { %726 = vrot.lane.b32.xlu0 %v1547_v4, %s1688_s9 }
 0xab9   :  { %v791_v6 = vpop.permute.xlu0 %790 }
 0xaba   :  { %v1941_v7 = vadd.f32 %v791_v6, %v783_v5 }
 0xabc   :  { %1548 = vtanh.f32 %v1941_v7 }
 0xac2   :  { %v1549_v8 = vpop.eup %1548 }
 0xac3   :  { %796 = vrot.lane.b32.xlu2 %v1549_v8, %s1688_s9 }
 0xb1d   :  { %v797_v9 = vpop.permute.xlu2 %796 }
 0xb1e   :  { %v799_v10 = vmul.f32 %v797_v9, %v780_v59  ;;  %v1075_v59 = vld [vmem:[#allocation2 + $0x18] sm:$0xff]  ;;  %v1475_v9 = vld [vmem:[%s2048_s3] ss:$0 sm:$0xff] }
 0xb1f   :  { %1088 = vmatpush.msra.mxu2 %v1075_v59 }
 0xb20   :  { %831 = vrot.lane.b32.xlu1 %v799_v10, %s1689_s10 }
 0xb21   :  { %1089 = vmatpush.msra.mxu2 %v1074_v60 }
 0xb23   :  { %1090 = vmatpush.msra.mxu2 %v1073_v61 }
 0xb25   :  { %v727_v11 = vpop.permute.xlu0 %726  ;;  %1091 = vmatpush.msra.mxu2 %v1072_v62 }
 0xb26   :  { %v729_v12 = vmul.f32 %v727_v11, %v710_v49 }
 0xb28   :  { %731 = vrot.lane.b32.xlu2 %v729_v12, %s1689_s10 }
 0xb82   :  { %v732_v14 = vpop.permute.xlu2 %731 }
 0xb83   :  { %1433 = vst.msk [vmem:[%s2050_s5 + $0x6] sm:$0x3] %vm233_vm13, %v732_v14  ;;  %1437 = vmatmul.msk.f32.vlgmr.msrb.gmra.mxu1 %vm72_vm4, %v732_v14  ;;  %v1448_v14 = vld [vmem:[%s2045_s0 + $0xc] sm:$0x3] }
 0xb84   :  { %1255 = vmatpush.msrb.mxu1 %v1075_v59 }
 0xb86   :  { %1256 = vmatpush.msrb.mxu1 %v1074_v60 }
 0xb88   :  { %1257 = vmatpush.msrb.mxu1 %v1073_v61  ;;  %v1137_v61 = vld [vmem:[#allocation4 + $0x18] sm:$0xff] }
 0xb89   :  { %1181 = vmatpush.msrb.mxu0 %v1137_v61 }
 0xb8a   :  { %1258 = vmatpush.msrb.mxu1 %v1072_v62  ;;  %v1136_v62 = vld [vmem:[#allocation4 + $0x10] sm:$0xff] }
 0xb8b   :  { %1182 = vmatpush.msrb.mxu0 %v1136_v62 }
 0xb92   :  { %v832_v13 = vpop.permute.xlu1 %831 }
 0xb93   :  { %1438 = vmatmul.msk.f32.vlgmr.msrb.gmra.mxu2 %vm72_vm4, %v832_v13  ;;  %1442 = vmatmul.msk.f32.vlgmr.msrb.gmra.mxu3 %vm72_vm4, %v832_v13 }
 0xc00   :  { %v827_v16 = vpop.f32.mrf.mxu1 }
 0xc16   :  { %v852_v18 = vpop.f32.mrf.mxu2  ;;  %v926_v19 = vpop.f32.mrf.mxu3 }
 0xc17   :  { %v853_v20 = vadd.f32 %v852_v18, %v827_v16  ;;  %v929_v22 = vadd.f32 %v1441_v15, %v926_v19 }
 0xc19   :  { %v859_v23 = vadd.f32 %v1474_v17, %v853_v20  ;;  %1550 = vtanh.f32 %v929_v22  ;;  %v1443_v33 = vmul.f32 -1.442695, %v929_v22 }
 0xc1b   :  { %1552 = vtanh.f32 %v859_v23  ;;  %v1439_v34 = vmul.f32 -1.442695, %v859_v23 }
 0xc1c   :  { %1554 = vpow2.f32 %v1443_v33 }
 0xc1d   :  { %1556 = vpow2.f32 %v1439_v34 }
 0xc1f   :  { %v1551_v24 = vpop.eup %1550 }
 0xc20   :  { %952 = vrot.lane.b32.xlu1 %v1551_v24, %s1688_s9 }
 0xc21   :  { %v1553_v27 = vpop.eup %1552 }
 0xc22   :  { %882 = vrot.lane.b32.xlu0 %v1553_v27, %s1688_s9  ;;  %v1555_v38 = vpop.eup %1554 }
 0xc23   :  { %v1557_v39 = vpop.eup %1556  ;;  %v933_v26 = vadd.f32 1.0, %v1555_v38 }
 0xc24   :  { %v863_v21 = vadd.f32 1.0, %v1557_v39 }
 0xc25   :  { %1558 = vrcp.f32 %v933_v26  ;;  %v945_v29 = vand.u32 2147483648, %v933_v26  ;;  %vm939_vm10 = vweird.f32 %v933_v26  ;;  %v943_v30 = vand.u32 2147483647, %v933_v26 }
 0xc26   :  { %1560 = vrcp.f32 %v863_v21  ;;  %v875_v35 = vand.u32 2147483648, %v863_v21  ;;  %vm869_vm14 = vweird.f32 %v863_v21  ;;  %v873_v36 = vand.u32 2147483647, %v863_v21 }
 0xc27   :  { %v946_v37 = vor.u32 1.1754944e-38, %v945_v29  ;;  %vm944_vm0 = vcmp.eq.f32.partialorder %v943_v30, 8.507059e+37 }
 0xc28   :  { %v876_v46 = vor.u32 1.1754944e-38, %v875_v35  ;;  %vm874_vm1 = vcmp.eq.f32.partialorder %v873_v36, 8.507059e+37 }
 0xc2b   :  { %v1559_v40 = vpop.eup %1558 }
 0xc2c   :  { %v1561_v41 = vpop.eup %1560  ;;  %v935_v42 = vmul.f32 %v1559_v40, %v933_v26  ;;  %vm940_vm9 = vweird.f32 %v1559_v40 }
 0xc2d   :  { %v865_v25 = vmul.f32 %v1561_v41, %v863_v21  ;;  %vm870_vm11 = vweird.f32 %v1561_v41  ;;  %vm941_vm12 = vmor %vm939_vm10, %vm940_vm9 }
 0xc2e   :  { %v936_v0 = vsub.f32 1.0, %v935_v42  ;;  %vm871_vm15 = vmor %vm869_vm14, %vm870_vm11 }
 0xc2f   :  { %v866_v1 = vsub.f32 1.0, %v865_v25 }
 0xc30   :  { %v937_v2 = vmul.f32 %v1559_v40, %v936_v0 }
 0xc31   :  { %v867_v3 = vmul.f32 %v1561_v41, %v866_v1 }
 0xc32   :  { %v938_v28 = vadd.f32 %v1559_v40, %v937_v2 }
 0xc33   :  { %v868_v31 = vadd.f32 %v1561_v41, %v867_v3 }
 0xc34   :  { %v942_v32 = vsel %vm941_vm12, %v1559_v40, %v938_v28 }
 0xc35   :  { %v872_v43 = vsel %vm871_vm15, %v1561_v41, %v868_v31  ;;  %v947_v45 = vsel %vm944_vm0, %v946_v37, %v942_v32 }
 0xc36   :  { %v877_v49 = vsel %vm874_vm1, %v876_v46, %v872_v43  ;;  %v950_v55 = vmul.f32 %v947_v45, %v1941_v7 }
 0xc37   :  { %v880_v51 = vmul.f32 %v877_v49, %v1936_v63 }
 0xc92   :  { %v953_v44 = vpop.permute.xlu1 %952 }
 0xc93   :  { %v955_v47 = vmul.f32 %v953_v44, %v947_v45 }
 0xc94   :  { %v883_v48 = vpop.permute.xlu0 %882 }
 0xc95   :  { %v885_v50 = vmul.f32 %v883_v48, %v877_v49  ;;  %957 = vrot.lane.b32.xlu0 %v955_v47, %s1688_s9 }
 0xc97   :  { %887 = vrot.lane.b32.xlu2 %v885_v50, %s1688_s9 }
 0xcf1   :  { %v888_v52 = vpop.permute.xlu2 %887 }
 0xcf2   :  { %v1965_v53 = vadd.f32 %v888_v52, %v880_v51 }
 0xcf4   :  { %1562 = vtanh.f32 %v1965_v53 }
 0xcfa   :  { %v1563_v54 = vpop.eup %1562 }
 0xcfb   :  { %893 = vrot.lane.b32.xlu1 %v1563_v54, %s1688_s9  ;;  %v1141_v54 = vld [vmem:[#allocation6 + $0x18] sm:$0xff] }
 0xcfc   :  { %1156 = vmatpush.msra.mxu3 %v1141_v54  ;;  %1323 = vmatpush.msrb.mxu2 %v1141_v54 }
 0xd07   :  { %v958_v56 = vpop.permute.xlu0 %957 }
 0xd08   :  { %v1970_v57 = vadd.f32 %v958_v56, %v950_v55  ;;  %v1139_v55 = vld [vmem:[#allocation6 + $0x8] sm:$0xff]  ;;  %v1138_v56 = vld [vmem:[#allocation6] sm:$0xff] }
 0xd0a   :  { %1564 = vtanh.f32 %v1970_v57 }
 0xd10   :  { %v1565_v58 = vpop.eup %1564 }
 0xd11   :  { %963 = vrot.lane.b32.xlu2 %v1565_v58, %s1688_s9 }
 0xd6b   :  { %v964_v63 = vpop.permute.xlu2 %963 }
 0xd6c   :  { %v966_v4 = vmul.f32 %v964_v63, %v947_v45  ;;  %v1135_v63 = vld [vmem:[#allocation4 + $0x8] sm:$0xff] }
 0xd6d   :  { %v894_v5 = vpop.permute.xlu1 %893  ;;  %1183 = vmatpush.msrb.mxu0 %v1135_v63 }
 0xd6e   :  { %v896_v6 = vmul.f32 %v894_v5, %v877_v49  ;;  %998 = vrot.lane.b32.xlu1 %v966_v4, %s1689_s10  ;;  %v1134_v4 = vld [vmem:[#allocation4] sm:$0xff] }
 0xd6f   :  { %1184 = vmatpush.msrb.mxu0 %v1134_v4 }
 0xd70   :  { %898 = vrot.lane.b32.xlu0 %v896_v6, %s1689_s10 }
 0xde0   :  { %v999_v7 = vpop.permute.xlu1 %998 }
 0xde1   :  { %1445 = vmatmul.msk.f32.vlgmr.msra.gmra.mxu1 %vm72_vm4, %v999_v7  ;;  %1449 = vmatmul.msk.f32.vlgmr.msra.gmra.mxu2 %vm72_vm4, %v999_v7  ;;  %v1455_v7 = vld [vmem:[%s2045_s0 + $0xe] sm:$0x3] }
 0xde2   :  { %v899_v8 = vpop.permute.xlu0 %898 }
 0xde3   :  { %1440 = vst.msk [vmem:[%s2050_s5 + $0x8] sm:$0x3] %vm233_vm13, %v899_v8  ;;  %1444 = vmatmul.msk.f32.vlgmr.msra.gmra.mxu0 %vm72_vm4, %v899_v8 }
 0xe5e   :  { %v1019_v10 = vpop.f32.mrf.mxu1 }
 0xe60   :  { %v994_v11 = vpop.f32.mrf.mxu0 }
 0xe61   :  { %v1020_v12 = vadd.f32 %v1019_v10, %v994_v11 }
 0xe63   :  { %v1026_v13 = vadd.f32 %v1475_v9, %v1020_v12  ;;  %v1476_v9 = vld [vmem:[%s2048_s3] ss:$0 sm:$0xff] }
 0xe64   :  { %v1093_v15 = vpop.f32.mrf.mxu2 }
 0xe65   :  { %1566 = vtanh.f32 %v1026_v13  ;;  %v1096_v16 = vadd.f32 %v1448_v14, %v1093_v15  ;;  %v1446_v19 = vmul.f32 -1.442695, %v1026_v13 }
 0xe67   :  { %1568 = vtanh.f32 %v1096_v16  ;;  %v1450_v27 = vmul.f32 -1.442695, %v1096_v16 }
 0xe68   :  { %1570 = vpow2.f32 %v1446_v19 }
 0xe6b   :  { %v1567_v17 = vpop.eup %1566 }
 0xe6c   :  { %1049 = vrot.lane.b32.xlu2 %v1567_v17, %s1688_s9 }
 0xe6d   :  { %v1569_v18 = vpop.eup %1568 }
 0xe6e   :  { %1119 = vrot.lane.b32.xlu0 %v1569_v18, %s1688_s9  ;;  %v1571_v20 = vpop.eup %1570 }
 0xe6f   :  { %v1030_v22 = vadd.f32 1.0, %v1571_v20 }
 0xe71   :  { %1572 = vrcp.f32 %v1030_v22  ;;  %v1042_v26 = vand.u32 2147483648, %v1030_v22  ;;  %vm1036_vm3 = vweird.f32 %v1030_v22  ;;  %v1040_v40 = vand.u32 2147483647, %v1030_v22 }
 0xe72   :  { %1574 = vpow2.f32 %v1450_v27 }
 0xe73   :  { %v1043_v42 = vor.u32 1.1754944e-38, %v1042_v26  ;;  %vm1041_vm6 = vcmp.eq.f32.partialorder %v1040_v40, 8.507059e+37 }
 0xe77   :  { %v1573_v23 = vpop.eup %1572 }
 0xe78   :  { %v1032_v24 = vmul.f32 %v1573_v23, %v1030_v22  ;;  %v1575_v38 = vpop.eup %1574  ;;  %vm1037_vm2 = vweird.f32 %v1573_v23 }
 0xe79   :  { %v1100_v21 = vadd.f32 1.0, %v1575_v38  ;;  %vm1038_vm5 = vmor %vm1036_vm3, %vm1037_vm2 }
 0xe7a   :  { %v1033_v33 = vsub.f32 1.0, %v1032_v24 }
 0xe7b   :  { %1576 = vrcp.f32 %v1100_v21  ;;  %v1112_v31 = vand.u32 2147483648, %v1100_v21  ;;  %vm1106_vm8 = vweird.f32 %v1100_v21  ;;  %v1110_v35 = vand.u32 2147483647, %v1100_v21 }
 0xe7c   :  { %v1034_v34 = vmul.f32 %v1573_v23, %v1033_v33 }
 0xe7d   :  { %v1113_v36 = vor.u32 1.1754944e-38, %v1112_v31  ;;  %vm1111_vm10 = vcmp.eq.f32.partialorder %v1110_v35, 8.507059e+37 }
 0xe7e   :  { %v1035_v39 = vadd.f32 %v1573_v23, %v1034_v34 }
 0xe80   :  { %v1039_v41 = vsel %vm1038_vm5, %v1573_v23, %v1035_v39 }
 0xe81   :  { %v1044_v0 = vsel %vm1041_vm6, %v1043_v42, %v1039_v41  ;;  %v1577_v2 = vpop.eup %1576 }
 0xe82   :  { %v1102_v3 = vmul.f32 %v1577_v2, %v1100_v21  ;;  %vm1107_vm7 = vweird.f32 %v1577_v2  ;;  %v1047_v45 = vmul.f32 %v1044_v0, %v1965_v53  ;;  %v1140_v53 = vld [vmem:[#allocation6 + $0x10] sm:$0xff] }
 0xe83   :  { %vm1108_vm9 = vmor %vm1106_vm8, %vm1107_vm7  ;;  %1157 = vmatpush.msra.mxu3 %v1140_v53  ;;  %1324 = vmatpush.msrb.mxu2 %v1140_v53 }
 0xe84   :  { %v1103_v28 = vsub.f32 1.0, %v1102_v3 }
 0xe85   :  { %1158 = vmatpush.msra.mxu3 %v1139_v55  ;;  %1325 = vmatpush.msrb.mxu2 %v1139_v55 }
 0xe86   :  { %v1104_v29 = vmul.f32 %v1577_v2, %v1103_v28 }
 0xe87   :  { %1159 = vmatpush.msra.mxu3 %v1138_v56  ;;  %1326 = vmatpush.msrb.mxu2 %v1138_v56 }
 0xe88   :  { %v1105_v30 = vadd.f32 %v1577_v2, %v1104_v29 }
 0xe89   :  { %1348 = vmatpush.msrb.mxu3 %v1137_v61 }
 0xe8a   :  { %v1109_v32 = vsel %vm1108_vm9, %v1577_v2, %v1105_v30 }
 0xe8b   :  { %v1114_v43 = vsel %vm1111_vm10, %v1113_v36, %v1109_v32  ;;  %1349 = vmatpush.msrb.mxu3 %v1136_v62 }
 0xe8c   :  { %v1117_v48 = vmul.f32 %v1114_v43, %v1970_v57 }
 0xe8d   :  { %1350 = vmatpush.msrb.mxu3 %v1135_v63 }
 0xe8f   :  { %1351 = vmatpush.msrb.mxu3 %v1134_v4 }
 0xec6   :  { %v1050_v25 = vpop.permute.xlu2 %1049 }
 0xec7   :  { %v1052_v1 = vmul.f32 %v1050_v25, %v1044_v0 }
 0xec9   :  { %1054 = vrot.lane.b32.xlu1 %v1052_v1, %s1688_s9 }
 0xee0   :  { %v1120_v37 = vpop.permute.xlu0 %1119 }
 0xee1   :  { %v1122_v44 = vmul.f32 %v1120_v37, %v1114_v43 }
 0xee3   :  { %1124 = vrot.lane.b32.xlu2 %v1122_v44, %s1688_s9 }
 0xf3b   :  { %v1055_v46 = vpop.permute.xlu1 %1054 }
 0xf3c   :  { %v1994_v47 = vadd.f32 %v1055_v46, %v1047_v45 }
 0xf3d   :  { %v1125_v49 = vpop.permute.xlu2 %1124 }
 0xf3e   :  { %1578 = vtanh.f32 %v1994_v47  ;;  %v1998_v50 = vadd.f32 %v1125_v49, %v1117_v48 }
 0xf40   :  { %1580 = vtanh.f32 %v1998_v50 }
 0xf44   :  { %v1579_v51 = vpop.eup %1578 }
 0xf45   :  { %1060 = vrot.lane.b32.xlu0 %v1579_v51, %s1688_s9 }
 0xf46   :  { %v1581_v52 = vpop.eup %1580 }
 0xf47   :  { %1130 = vrot.lane.b32.xlu1 %v1581_v52, %s1688_s9 }
 0xfb7   :  { %v1061_v57 = vpop.permute.xlu0 %1060 }
 0xfb8   :  { %v1063_v58 = vmul.f32 %v1061_v57, %v1044_v0 }
 0xfb9   :  { %v1131_v59 = vpop.permute.xlu1 %1130 }
 0xfba   :  { %1065 = vrot.lane.b32.xlu2 %v1063_v58, %s1689_s10  ;;  %v1133_v60 = vmul.f32 %v1131_v59, %v1114_v43 }
 0xfbc   :  { %1165 = vrot.lane.b32.xlu0 %v1133_v60, %s1689_s10 }
0x1014   :  { %v1066_v5 = vpop.permute.xlu2 %1065 }
0x1015   :  { %1447 = vst.msk [vmem:[%s2050_s5 + $0xa] sm:$0x3] %vm233_vm13, %v1066_v5  ;;  %1451 = vmatmul.msk.f32.vlgmr.msra.gmra.mxu3 %vm72_vm4, %v1066_v5 }
0x102e   :  { %v1166_v6 = vpop.permute.xlu0 %1165 }
0x102f   :  { %1452 = vmatmul.msk.f32.vlgmr.msrb.gmra.mxu0 %vm72_vm4, %v1166_v6  ;;  %1456 = vmatmul.msk.f32.vlgmr.msrb.gmra.mxu1 %vm72_vm4, %v1166_v6 }
0x1098   :  { %v1161_v8 = vpop.f32.mrf.mxu3 }
0x10ac   :  { %v1186_v10 = vpop.f32.mrf.mxu0  ;;  %v1260_v11 = vpop.f32.mrf.mxu1 }
0x10ad   :  { %v1187_v12 = vadd.f32 %v1186_v10, %v1161_v8  ;;  %v1263_v14 = vadd.f32 %v1455_v7, %v1260_v11 }
0x10af   :  { %v1193_v13 = vadd.f32 %v1476_v9, %v1187_v12  ;;  %1582 = vtanh.f32 %v1263_v14  ;;  %v1457_v17 = vmul.f32 -1.442695, %v1263_v14 }
0x10b1   :  { %1584 = vtanh.f32 %v1193_v13  ;;  %v1453_v22 = vmul.f32 -1.442695, %v1193_v13 }
0x10b2   :  { %1586 = vpow2.f32 %v1457_v17 }
0x10b5   :  { %v1583_v15 = vpop.eup %1582 }
0x10b6   :  { %1286 = vrot.lane.b32.xlu2 %v1583_v15, %s1688_s9 }
0x10b7   :  { %v1585_v16 = vpop.eup %1584 }
0x10b8   :  { %1216 = vrot.lane.b32.xlu1 %v1585_v16, %s1688_s9  ;;  %v1587_v18 = vpop.eup %1586 }
0x10b9   :  { %v1267_v19 = vadd.f32 1.0, %v1587_v18 }
0x10bb   :  { %1588 = vrcp.f32 %v1267_v19  ;;  %v1279_v39 = vand.u32 2147483648, %v1267_v19  ;;  %vm1273_vm12 = vweird.f32 %v1267_v19  ;;  %v1277_v26 = vand.u32 2147483647, %v1267_v19 }
0x10bc   :  { %1590 = vpow2.f32 %v1453_v22 }
0x10bd   :  { %v1280_v40 = vor.u32 1.1754944e-38, %v1279_v39  ;;  %vm1278_vm15 = vcmp.eq.f32.partialorder %v1277_v26, 8.507059e+37 }
0x10c1   :  { %v1589_v20 = vpop.eup %1588 }
0x10c2   :  { %v1269_v23 = vmul.f32 %v1589_v20, %v1267_v19  ;;  %v1591_v33 = vpop.eup %1590  ;;  %vm1274_vm11 = vweird.f32 %v1589_v20 }
0x10c3   :  { %v1197_v38 = vadd.f32 1.0, %v1591_v33  ;;  %vm1275_vm14 = vmor %vm1273_vm12, %vm1274_vm11 }
0x10c4   :  { %v1270_v24 = vsub.f32 1.0, %v1269_v23 }
0x10c5   :  { %1592 = vrcp.f32 %v1197_v38  ;;  %v1209_v29 = vand.u32 2147483648, %v1197_v38  ;;  %vm1203_vm1 = vweird.f32 %v1197_v38  ;;  %v1207_v30 = vand.u32 2147483647, %v1197_v38 }
0x10c6   :  { %v1271_v27 = vmul.f32 %v1589_v20, %v1270_v24 }
0x10c7   :  { %v1210_v35 = vor.u32 1.1754944e-38, %v1209_v29  ;;  %vm1208_vm3 = vcmp.eq.f32.partialorder %v1207_v30, 8.507059e+37 }
0x10c8   :  { %v1272_v34 = vadd.f32 %v1589_v20, %v1271_v27 }
0x10ca   :  { %v1276_v21 = vsel %vm1275_vm14, %v1589_v20, %v1272_v34 }
0x10cb   :  { %v1281_v42 = vsel %vm1278_vm15, %v1280_v40, %v1276_v21  ;;  %v1593_v0 = vpop.eup %1592 }
0x10cc   :  { %v1199_v1 = vmul.f32 %v1593_v0, %v1197_v38  ;;  %vm1204_vm0 = vweird.f32 %v1593_v0  ;;  %v1284_v43 = vmul.f32 %v1281_v42, %v1998_v50 }
0x10cd   :  { %vm1205_vm2 = vmor %vm1203_vm1, %vm1204_vm0 }
0x10ce   :  { %v1200_v2 = vsub.f32 1.0, %v1199_v1 }
0x10d0   :  { %v1201_v3 = vmul.f32 %v1593_v0, %v1200_v2 }
0x10d2   :  { %v1202_v28 = vadd.f32 %v1593_v0, %v1201_v3 }
0x10d4   :  { %v1206_v31 = vsel %vm1205_vm2, %v1593_v0, %v1202_v28 }
0x10d5   :  { %v1211_v36 = vsel %vm1208_vm3, %v1210_v35, %v1206_v31 }
0x10d6   :  { %v1214_v48 = vmul.f32 %v1211_v36, %v1994_v47  ;;  %v1477_v47 = vld [vmem:[%s2048_s3] ss:$0 sm:$0xff] }
0x1110   :  { %v1287_v41 = vpop.permute.xlu2 %1286 }
0x1111   :  { %v1289_v25 = vmul.f32 %v1287_v41, %v1281_v42 }
0x1113   :  { %1291 = vrot.lane.b32.xlu1 %v1289_v25, %s1688_s9 }
0x112a   :  { %v1217_v32 = vpop.permute.xlu1 %1216 }
0x112b   :  { %v1219_v37 = vmul.f32 %v1217_v32, %v1211_v36 }
0x112d   :  { %1221 = vrot.lane.b32.xlu0 %v1219_v37, %s1688_s9 }
0x1185   :  { %v1292_v44 = vpop.permute.xlu1 %1291 }
0x1186   :  { %v1294_v45 = vadd.f32 %v1292_v44, %v1284_v43 }
0x1188   :  { %1594 = vtanh.f32 %v1294_v45 }
0x118e   :  { %v1595_v46 = vpop.eup %1594 }
0x118f   :  { %1297 = vrot.lane.b32.xlu0 %v1595_v46, %s1688_s9 }
0x119f   :  { %v1222_v49 = vpop.permute.xlu0 %1221 }
0x11a0   :  { %v1224_v51 = vadd.f32 %v1222_v49, %v1214_v48 }
0x11a2   :  { %1596 = vtanh.f32 %v1224_v51 }
0x11a8   :  { %v1597_v52 = vpop.eup %1596 }
0x11a9   :  { %1227 = vrot.lane.b32.xlu2 %v1597_v52, %s1688_s9 }
0x1201   :  { %v1298_v54 = vpop.permute.xlu0 %1297 }
0x1202   :  { %v1300_v53 = vmul.f32 %v1298_v54, %v1281_v42 }
0x1203   :  { %v1228_v55 = vpop.permute.xlu2 %1227 }
0x1204   :  { %v1230_v56 = vmul.f32 %v1228_v55, %v1211_v36  ;;  %1332 = vrot.lane.b32.xlu2 %v1300_v53, %s1689_s10 }
0x1206   :  { %1232 = vrot.lane.b32.xlu1 %v1230_v56, %s1689_s10 }
0x125e   :  { %v1333_v50 = vpop.permute.xlu2 %1332 }
0x125f   :  { %1459 = vmatmul.msk.f32.vlgmr.msrb.gmra.mxu3 %vm72_vm4, %v1333_v50 }
0x1278   :  { %v1233_v57 = vpop.permute.xlu1 %1232 }
0x1279   :  { %1454 = vst.msk [vmem:[%s2050_s5 + $0xc] sm:$0x3] %vm233_vm13, %v1233_v57  ;;  %1458 = vmatmul.msk.f32.vlgmr.msrb.gmra.mxu2 %vm72_vm4, %v1233_v57 }
0x12e2   :  { %v1353_v58 = vpop.f32.mrf.mxu3 }
0x12fc   :  { %v1328_v59 = vpop.f32.mrf.mxu2 }
0x12fd   :  { %v1354_v60 = vadd.f32 %v1353_v58, %v1328_v59 }
0x12ff   :  { %v1360_v61 = vadd.f32 %v1477_v47, %v1354_v60 }
0x1301   :  { %1598 = vtanh.f32 %v1360_v61  ;;  %v1460_v63 = vmul.f32 -1.442695, %v1360_v61 }
0x1303   :  { %1600 = vpow2.f32 %v1460_v63 }
0x1307   :  { %v1599_v62 = vpop.eup %1598 }
0x1308   :  { %1383 = vrot.lane.b32.xlu0 %v1599_v62, %s1688_s9 }
0x1309   :  { %v1601_v4 = vpop.eup %1600 }
0x130a   :  { %v1364_v5 = vadd.f32 1.0, %v1601_v4 }
0x130c   :  { %1602 = vrcp.f32 %v1364_v5  ;;  %v1376_v11 = vand.u32 2147483648, %v1364_v5  ;;  %vm1370_vm5 = vweird.f32 %v1364_v5  ;;  %v1374_v12 = vand.u32 2147483647, %v1364_v5 }
0x130e   :  { %v1377_v13 = vor.u32 1.1754944e-38, %v1376_v11  ;;  %vm1375_vm7 = vcmp.eq.f32.partialorder %v1374_v12, 8.507059e+37 }
0x1312   :  { %v1603_v6 = vpop.eup %1602 }
0x1313   :  { %v1366_v7 = vmul.f32 %v1603_v6, %v1364_v5  ;;  %vm1371_vm4 = vweird.f32 %v1603_v6 }
0x1314   :  { %vm1372_vm6 = vmor %vm1370_vm5, %vm1371_vm4 }
0x1315   :  { %v1367_v8 = vsub.f32 1.0, %v1366_v7 }
0x1317   :  { %v1368_v9 = vmul.f32 %v1603_v6, %v1367_v8 }
0x1319   :  { %v1369_v10 = vadd.f32 %v1603_v6, %v1368_v9 }
0x131b   :  { %v1373_v14 = vsel %vm1372_vm6, %v1603_v6, %v1369_v10 }
0x131c   :  { %v1378_v16 = vsel %vm1375_vm7, %v1377_v13, %v1373_v14 }
0x131d   :  { %v1381_v18 = vmul.f32 %v1378_v16, %v1224_v51 }
0x137a   :  { %v1384_v15 = vpop.permute.xlu0 %1383 }
0x137b   :  { %v1386_v17 = vmul.f32 %v1384_v15, %v1378_v16 }
0x137d   :  { %1388 = vrot.lane.b32.xlu1 %v1386_v17, %s1688_s9 }
0x13ef   :  { %v1389_v19 = vpop.permute.xlu1 %1388 }
0x13f0   :  { %v1391_v20 = vadd.f32 %v1389_v19, %v1381_v18 }
0x13f2   :  { %1604 = vtanh.f32 %v1391_v20 }
0x13f8   :  { %v1605_v22 = vpop.eup %1604 }
0x13f9   :  { %1394 = vrot.lane.b32.xlu2 %v1605_v22, %s1688_s9 }
0x1453   :  { %v1395_v23 = vpop.permute.xlu2 %1394 }
0x1454   :  { %v1397_v24 = vmul.f32 %v1395_v23, %v1378_v16 }
0x1456   :  { %1399 = vrot.lane.b32.xlu0 %v1397_v24, %s1689_s10 }
0x14c8   :  { %v1400_v27 = vpop.permute.xlu0 %1399 }
0x14c9   :  { %1461 = vst.msk [vmem:[%s2050_s5 + $0xe] sm:$0x3] %vm233_vm13, %v1400_v27 }
0x14ca   :  { %1408 = vsyncpa [#allocation3], 1 }
0x14cb   :  { %1409 = vsyncpa [#allocation5], 1 }

</bundles_post_ra>
